<compile_context>
chip_gen: v7x
topology: tpu7x:2x2x1
jax: 0.10.0
libtpu: 0.0.40
codegen_flags: <defaults>
</compile_context>

<pallas_src>
import math
import numpy as np
import jax
import jax.numpy as jnp
from jax.experimental import pallas as pl
from jax.experimental.pallas import tpu as pltpu

# ---------------------------------------------------------------------------
# Scaled-down, self-consistent PPOConfig-like settings.
# ---------------------------------------------------------------------------
STATE_DIM    = 32
HIDDEN_DIMS  = (64, 32, 32)   # hidden_dims[0] feeds the LSTM; [1:] are MLP layers
LSTM_HIDDEN  = 64
LSTM_LAYERS  = 2
NUM_HEADS    = 8
DISCRETE_DIM = 3
CONT_DIM     = 1
BATCH        = 4
LN_EPS       = 1e-5
BN_EPS       = 1e-5
N_TBLOCKS    = 2

EMB    = LSTM_HIDDEN          # transformer embed dim
FF_DIM = 4 * EMB              # transformer feed-forward dim
HEAD_W = 128                  # lane-dense width of the fused output slab
VEC_W  = 256                  # lane width of packed vector slab / fused LSTM slab

# w64 slab layout (indices)
W_FEAT = 0
W_ATTN = 1                               # one folded wv@wo per block
W_MLP  = W_ATTN + N_TBLOCKS              # one folded (Linear+BN) per MLP layer
N_W64  = W_MLP + (len(HIDDEN_DIMS) - 1)
N_VEC  = 1 + LSTM_LAYERS + 7 * N_TBLOCKS + (len(HIDDEN_DIMS) - 1) + 3

assert HIDDEN_DIMS[0] == EMB and 2 * LSTM_HIDDEN == HEAD_W
assert DISCRETE_DIM + 2 * CONT_DIM <= HEAD_W
assert max(HIDDEN_DIMS[1:]) <= EMB and FF_DIM <= VEC_W and HEAD_W <= VEC_W
assert EMB % NUM_HEADS == 0 and STATE_DIM % 8 == 0


# ---------------------------------------------------------------------------
# Shared math helpers
# ---------------------------------------------------------------------------
def _layer_norm(x, g, b):
    mu = jnp.mean(x, axis=-1, keepdims=True)
    var = jnp.mean(jnp.square(x - mu), axis=-1, keepdims=True)
    return (x - mu) * jax.lax.rsqrt(var + LN_EPS) * g + b


def _gelu_tanh(x):
    # TODO(synk): PyTorch nn.GELU() default is the exact erf GELU; the tanh
    # approximation is used here (difference <1e-3 for typical activations).
    c = 0.7978845608028654  # sqrt(2/pi)
    return 0.5 * x * (1.0 + jnp.tanh(c * (x + 0.044715 * x * x * x)))


# ---------------------------------------------------------------------------
# Pallas kernel: single grid-less invocation.  Early-stage weights arrive via
# auto-DMA (VMEM specs); later-stage slabs are ANY/HBM and manually copied so
# their DMA overlaps the feature+LSTM compute.
# ---------------------------------------------------------------------------
def actor_kernel(state_ref, w64_ref, wlstm_ref, vec_ref,
                 ff1_hbm, ff2_hbm, whead_hbm,
                 out_ref,
                 ff1_buf, ff2_buf, whead_buf, dma_sem):
    E = EMB

    # Kick off DMAs for the slabs only needed after the LSTM stage.
    ff1_cp = pltpu.make_async_copy(ff1_hbm, ff1_buf, dma_sem.at[0])
    ff2_cp = pltpu.make_async_copy(ff2_hbm, ff2_buf, dma_sem.at[1])
    whd_cp = pltpu.make_async_copy(whead_hbm, whead_buf, dma_sem.at[2])
    ff1_cp.start(); ff2_cp.start(); whd_cp.start()

    def vec(row, n):
        # (1, n) bias / LN / bound row, static slice out of the packed f32 slab
        return vec_ref[row:row + 1, :n]

    def dot(a, w):
        # bf16 MXU matmul, f32 accumulation; activations stay f32 elsewhere.
        return jnp.dot(a.astype(jnp.bfloat16), w, preferred_element_type=jnp.float32)

    # ---- feature extractor: Linear -> ReLU (Dropout = identity in eval) ----
    # state is passed unpadded; contract against the first STATE_DIM rows only.
    x = jnp.maximum(dot(state_ref[...], w64_ref[W_FEAT][:STATE_DIM]) + vec(0, E), 0.0)

    # ---- LSTM: 2 layers, single timestep, hidden=None (zero init state) ----
    # h_prev = c_prev = 0 => recurrent matmul and forget gate are dead.
    # Fused gate slab columns are [i | o | g | 0]; one dot per layer, sigmoid
    # over the first 128 lanes, o recovered with a lane roll (XLU).
    r = 1
    for layer in range(LSTM_LAYERS):
        gates = dot(x, wlstm_ref[layer]) + vec_ref[r:r + 1, :]       # (B, 256)
        sig = jax.nn.sigmoid(gates[:, :2 * E])                       # [i | o]
        g_g = jnp.tanh(gates[:, 2 * E:3 * E])
        i_g = sig[:, :E]
        o_g = pltpu.roll(sig, shift=E, axis=1)[:, :E]
        c = i_g * g_g
        h = o_g * jnp.tanh(c)
        out_ref[1 + layer] = jnp.concatenate([h, c], axis=-1)        # lane-dense (B, 2E)
        x = h
        r += 1

    # Later-stage weight slabs must have landed by now.
    ff1_cp.wait(); ff2_cp.wait(); whd_cp.wait()

    # ---- 2 transformer blocks (seq_len == 1: softmax == 1, context == V) ---
    for blk in range(N_TBLOCKS):
        attn = dot(x, w64_ref[W_ATTN + blk]) + vec(r, E)             # folded wv@wo
        x = _layer_norm(x + attn, vec(r + 1, E), vec(r + 2, E))
        ff = _gelu_tanh(dot(x, ff1_buf[blk]) + vec(r + 3, FF_DIM))
        ff = dot(ff, ff2_buf[blk]) + vec(r + 4, E)
        x = _layer_norm(x + ff, vec(r + 5, E), vec(r + 6, E))
        r += 7

    # ---- hidden MLP layers: Linear (eval BatchNorm folded in) -> ReLU ------
    for m in range(len(HIDDEN_DIMS) - 1):
        x = jnp.maximum(dot(x, w64_ref[W_MLP + m]) + vec(r, E), 0.0)
        r += 1

    # ---- fused heads: [logits | pos_mean | pos_log_std | zero pad] ---------
    # Per-lane clamp bound rows: -1e30/+1e30 everywhere except the log_std
    # lanes which carry -20 / 2 -> one max + one min.
    head = dot(x, whead_buf[...]) + vec(r, HEAD_W)
    out_ref[0] = jnp.minimum(jnp.maximum(head, vec(r + 1, HEAD_W)), vec(r + 2, HEAD_W))


def _actor_forward_pallas(state, packed):
    w64, wlstm, ff1, ff2, w_head, vecs = packed
    B = state.shape[0]
    Bp = max(8, ((B + 7) // 8) * 8)                 # pad batch to sublane quantum
    state_p = jnp.pad(state, ((0, Bp - B), (0, 0)))
    vmem = pl.BlockSpec(memory_space=pltpu.MemorySpace.VMEM)
    hbm = pl.BlockSpec(memory_space=pl.ANY)
    out = pl.pallas_call(
        actor_kernel,
        out_shape=jax.ShapeDtypeStruct((1 + LSTM_LAYERS, Bp, HEAD_W), jnp.float32),
        in_specs=[vmem, vmem, vmem, vmem, hbm, hbm, hbm],
        out_specs=vmem,
        scratch_shapes=[
            pltpu.VMEM((N_TBLOCKS, EMB, FF_DIM), jnp.bfloat16),
            pltpu.VMEM((N_TBLOCKS, FF_DIM, EMB), jnp.bfloat16),
            pltpu.VMEM((EMB, HEAD_W), jnp.bfloat16),
            pltpu.SemaphoreType.DMA((3,)),
        ],
    )(state_p, w64, wlstm, vecs, ff1, ff2, w_head)
    head = out[0, :B]
    logits  = head[:, :DISCRETE_DIM]
    pmean   = head[:, DISCRETE_DIM:DISCRETE_DIM + CONT_DIM]
    plogstd = head[:, DISCRETE_DIM + CONT_DIM:DISCRETE_DIM + 2 * CONT_DIM]
    h_n = out[1:, :B, :LSTM_HIDDEN]
    c_n = out[1:, :B, LSTM_HIDDEN:]
    return logits, pmean, plogstd, h_n, c_n


actor_forward_pallas = jax.jit(_actor_forward_pallas)


# ---------------------------------------------------------------------------
# Parameter init in PyTorch layout (mirrors ActorNetwork._initialize_weights):
#   - all nn.Linear: orthogonal weight gain sqrt(2), zero bias
#   - heads: orthogonal gain 0.01
#   - LSTM: PyTorch default U(-1/sqrt(H), 1/sqrt(H))
#   - LayerNorm gamma=1, beta=0; BatchNorm gamma=1, beta=0, mean=0, var=1
# ---------------------------------------------------------------------------
def init_params(key):
    kit = iter(jax.random.split(key, 128))
    g2 = float(np.sqrt(2.0))
    ortho = lambda shape, gain: jax.nn.initializers.orthogonal(scale=gain)(
        next(kit), shape, jnp.float32)
    zeros = lambda n: jnp.zeros((n,), jnp.float32)
    ones = lambda n: jnp.ones((n,), jnp.float32)

    p = {}
    E, H0 = EMB, HIDDEN_DIMS[0]
    p['feat_w'] = ortho((H0, STATE_DIM), g2); p['feat_b'] = zeros(H0)

    k = 1.0 / math.sqrt(LSTM_HIDDEN)
    in_dim = H0
    for l in range(LSTM_LAYERS):
        p[f'lstm_wih_{l}'] = jax.random.uniform(next(kit), (4 * E, in_dim), jnp.float32, -k, k)
        p[f'lstm_whh_{l}'] = jax.random.uniform(next(kit), (4 * E, E), jnp.float32, -k, k)
        p[f'lstm_bih_{l}'] = jax.random.uniform(next(kit), (4 * E,), jnp.float32, -k, k)
        p[f'lstm_bhh_{l}'] = jax.random.uniform(next(kit), (4 * E,), jnp.float32, -k, k)
        in_dim = E

    for b in range(N_TBLOCKS):
        for name in ('q', 'k', 'v', 'o'):
            p[f'{name}_w_{b}'] = ortho((E, E), g2)
            p[f'{name}_b_{b}'] = zeros(E)
        p[f'ln1_g_{b}'] = ones(E); p[f'ln1_b_{b}'] = zeros(E)
        p[f'ff1_w_{b}'] = ortho((FF_DIM, E), g2); p[f'ff1_b_{b}'] = zeros(FF_DIM)
        p[f'ff2_w_{b}'] = ortho((E, FF_DIM), g2); p[f'ff2_b_{b}'] = zeros(E)
        p[f'ln2_g_{b}'] = ones(E); p[f'ln2_b_{b}'] = zeros(E)

    cur = E
    for i, hd in enumerate(HIDDEN_DIMS[1:]):
        p[f'mlp_w_{i}'] = ortho((hd, cur), g2); p[f'mlp_b_{i}'] = zeros(hd)
        p[f'bn_g_{i}'] = ones(hd); p[f'bn_b_{i}'] = zeros(hd)
        p[f'bn_mean_{i}'] = zeros(hd); p[f'bn_var_{i}'] = ones(hd)
        cur = hd

    p['action_w'] = ortho((DISCRETE_DIM, cur), 0.01); p['action_b'] = zeros(DISCRETE_DIM)
    p['pmean_w'] = ortho((CONT_DIM, cur), 0.01); p['pmean_b'] = zeros(CONT_DIM)
    p['plogstd_w'] = ortho((CONT_DIM, cur), 0.01); p['plogstd_b'] = zeros(CONT_DIM)
    return p


# ---------------------------------------------------------------------------
# Host-side folding + packing into the kernel's lane-dense slabs.
# All folds are done in f32; matmul slabs are rounded to bf16 once at the end.
# ---------------------------------------------------------------------------
def pack_params(p):
    E, H = EMB, LSTM_HIDDEN
    f32 = jnp.float32

    def vrow(v):
        v = jnp.asarray(v, f32).reshape(-1)
        return jnp.pad(v, (0, VEC_W - v.shape[0]))

    w64, rows = [], []

    # feature extractor (weight stored (in,out); rows >= STATE_DIM are zero)
    w64.append(jnp.pad(p['feat_w'].T, ((0, E - STATE_DIM), (0, 0))))
    rows.append(vrow(p['feat_b']))

    # LSTM: fused gate slab per layer, columns [i | o | g | 0]; bih+bhh summed.
    # (PyTorch gate order in weight_ih is i, f, g, o; forget gate is dead.)
    wlstm = []
    for l in range(LSTM_LAYERS):
        wih = p[f'lstm_wih_{l}']
        bsum = p[f'lstm_bih_{l}'] + p[f'lstm_bhh_{l}']
        sl_i, sl_g, sl_o = slice(0, H), slice(2 * H, 3 * H), slice(3 * H, 4 * H)
        wcat = jnp.concatenate([wih[sl_i].T, wih[sl_o].T, wih[sl_g].T], axis=1)  # (in, 3H)
        wlstm.append(jnp.pad(wcat, ((0, 0), (0, VEC_W - 3 * H))))
        rows.append(vrow(jnp.concatenate([bsum[sl_i], bsum[sl_o], bsum[sl_g]])))

    # transformer blocks: fold V/Out projections; Q/K are dead at seq_len==1.
    for b in range(N_TBLOCKS):
        wv, wo = p[f'v_w_{b}'].T, p[f'o_w_{b}'].T
        w64.append(wv @ wo)
        rows.append(vrow(p[f'v_b_{b}'] @ wo + p[f'o_b_{b}']))
        rows.append(vrow(p[f'ln1_g_{b}'])); rows.append(vrow(p[f'ln1_b_{b}']))
        rows.append(vrow(p[f'ff1_b_{b}'])); rows.append(vrow(p[f'ff2_b_{b}']))
        rows.append(vrow(p[f'ln2_g_{b}'])); rows.append(vrow(p[f'ln2_b_{b}']))

    # hidden MLP: fold eval-mode BatchNorm into the Linear, pad dims to EMB.
    cur = E
    for i, hd in enumerate(HIDDEN_DIMS[1:]):
        w = p[f'mlp_w_{i}'].T                                   # (cur, hd)
        scale = p[f'bn_g_{i}'] * jax.lax.rsqrt(p[f'bn_var_{i}'] + BN_EPS)
        w_f = w * scale[None, :]
        b_f = (p[f'mlp_b_{i}'] - p[f'bn_mean_{i}']) * scale + p[f'bn_b_{i}']
        w64.append(jnp.zeros((E, E), f32).at[:cur, :hd].set(w_f))
        rows.append(vrow(b_f))
        cur = hd

    # fused heads: [action_logits | position_mean | position_log_std | 0-pad]
    head_w = jnp.concatenate(
        [p['action_w'].T, p['pmean_w'].T, p['plogstd_w'].T], axis=1)   # (cur, 5)
    head_b = jnp.concatenate([p['action_b'], p['pmean_b'], p['plogstd_b']])
    w_head = jnp.zeros((E, HEAD_W), f32).at[:cur, :head_w.shape[1]].set(head_w)
    rows.append(vrow(head_b))

    # per-lane clamp bounds: only the log_std lanes are actually clamped
    lo = np.full((HEAD_W,), -1e30, np.float32)
    hi = np.full((HEAD_W,), 1e30, np.float32)
    lo[DISCRETE_DIM + CONT_DIM:DISCRETE_DIM + 2 * CONT_DIM] = -20.0
    hi[DISCRETE_DIM + CONT_DIM:DISCRETE_DIM + 2 * CONT_DIM] = 2.0
    rows.append(vrow(lo)); rows.append(vrow(hi))

    ff1 = jnp.stack([p[f'ff1_w_{b}'].T for b in range(N_TBLOCKS)])     # (2, 64, 256)
    ff2 = jnp.stack([p[f'ff2_w_{b}'].T for b in range(N_TBLOCKS)])     # (2, 256, 64)

    bf16 = jnp.bfloat16
    w64 = jnp.stack(w64).astype(bf16)
    wlstm = jnp.stack(wlstm).astype(bf16)
    ff1 = ff1.astype(bf16)
    ff2 = ff2.astype(bf16)
    w_head = w_head.astype(bf16)
    vecs = jnp.stack(rows)                                             # f32
    assert w64.shape == (N_W64, E, E)
    assert wlstm.shape == (LSTM_LAYERS, E, VEC_W)
    assert vecs.shape == (N_VEC, VEC_W)
    return w64, wlstm, ff1, ff2, w_head, vecs


# ---------------------------------------------------------------------------
# Pure-JAX reference: faithful (unfolded, f32) eval-mode forward of the module.
# ---------------------------------------------------------------------------
def reference_forward(state, p):
    E = EMB
    x = jnp.maximum(state @ p['feat_w'].T + p['feat_b'], 0.0)

    hs, cs = [], []
    for l in range(LSTM_LAYERS):
        h_prev = jnp.zeros((x.shape[0], E), jnp.float32)
        c_prev = jnp.zeros((x.shape[0], E), jnp.float32)
        gates = (x @ p[f'lstm_wih_{l}'].T + p[f'lstm_bih_{l}']
                 + h_prev @ p[f'lstm_whh_{l}'].T + p[f'lstm_bhh_{l}'])
        i_g = jax.nn.sigmoid(gates[:, 0:E])
        f_g = jax.nn.sigmoid(gates[:, E:2 * E])
        g_g = jnp.tanh(gates[:, 2 * E:3 * E])
        o_g = jax.nn.sigmoid(gates[:, 3 * E:4 * E])
        c = f_g * c_prev + i_g * g_g
        h = o_g * jnp.tanh(c)
        hs.append(h); cs.append(c)
        x = h

    hd = E // NUM_HEADS
    xb = x[:, None, :]
    for b in range(N_TBLOCKS):
        B_, S, _ = xb.shape
        proj = lambda n: xb @ p[f'{n}_w_{b}'].T + p[f'{n}_b_{b}']
        Q = proj('q').reshape(B_, S, NUM_HEADS, hd).transpose(0, 2, 1, 3)
        K = proj('k').reshape(B_, S, NUM_HEADS, hd).transpose(0, 2, 1, 3)
        V = proj('v').reshape(B_, S, NUM_HEADS, hd).transpose(0, 2, 1, 3)
        scores = Q @ jnp.swapaxes(K, -1, -2) / math.sqrt(hd)
        ctx = (jax.nn.softmax(scores, axis=-1) @ V).transpose(0, 2, 1, 3).reshape(B_, S, E)
        attn_out = ctx @ p[f'o_w_{b}'].T + p[f'o_b_{b}']
        xb = _layer_norm(xb + attn_out, p[f'ln1_g_{b}'], p[f'ln1_b_{b}'])
        ff = _gelu_tanh(xb @ p[f'ff1_w_{b}'].T + p[f'ff1_b_{b}'])
        ff = ff @ p[f'ff2_w_{b}'].T + p[f'ff2_b_{b}']
        xb = _layer_norm(xb + ff, p[f'ln2_g_{b}'], p[f'ln2_b_{b}'])
    x = xb[:, 0, :]

    for i, _ in enumerate(HIDDEN_DIMS[1:]):
        x = x @ p[f'mlp_w_{i}'].T + p[f'mlp_b_{i}']
        x = ((x - p[f'bn_mean_{i}']) * jax.lax.rsqrt(p[f'bn_var_{i}'] + BN_EPS)
             * p[f'bn_g_{i}'] + p[f'bn_b_{i}'])
        x = jnp.maximum(x, 0.0)

    logits = x @ p['action_w'].T + p['action_b']
    pmean = x @ p['pmean_w'].T + p['pmean_b']
    plogstd = jnp.clip(x @ p['plogstd_w'].T + p['plogstd_b'], -20.0, 2.0)
    return logits, pmean, plogstd, jnp.stack(hs), jnp.stack(cs)


if __name__ == "__main__":
    key = jax.random.PRNGKey(0)
    pkey, skey = jax.random.split(key)
    params = init_params(pkey)
    state = jax.random.normal(skey, (BATCH, STATE_DIM), jnp.float32)

    packed = pack_params(params)
    outs = actor_forward_pallas(state, packed)
    outs = jax.block_until_ready(outs)

    # cross-check the folded/packed (bf16-weight) Pallas kernel against the
    # faithful f32 XLA math
    ref = reference_forward(state, params)
    for name, got, want in zip(("logits", "pos_mean", "pos_log_std", "h_n", "c_n"),
                               outs, ref):
        np.testing.assert_allclose(np.asarray(got), np.asarray(want),
                                   rtol=1e-2, atol=1e-2, err_msg=name)

    print("KERNEL_OK")
</pallas_src>

<mosaic_0001>
module attributes {stable_mosaic.version = 11 : i64} {
  func.func @actor_kernel(%arg0: memref<8x32xf32, #tpu.memory_space<vmem>>, %arg1: memref<5x64x64xbf16, #tpu.memory_space<vmem>>, %arg2: memref<2x64x256xbf16, #tpu.memory_space<vmem>>, %arg3: memref<22x256xf32, #tpu.memory_space<vmem>>, %arg4: memref<2x64x256xbf16, #tpu.memory_space<any>>, %arg5: memref<2x256x64xbf16, #tpu.memory_space<any>>, %arg6: memref<64x128xbf16, #tpu.memory_space<any>>, %arg7: memref<3x8x128xf32, #tpu.memory_space<vmem>>, %arg8: memref<2x64x256xbf16, #tpu.memory_space<vmem>>, %arg9: memref<2x256x64xbf16, #tpu.memory_space<vmem>>, %arg10: memref<64x128xbf16, #tpu.memory_space<vmem>>, %arg11: memref<3x!tpu.dma_semaphore, #tpu.memory_space<semaphore_mem>>) attributes {dimension_semantics = [], scalar_prefetch = 0 : i64, scratch_operands = 4 : i64, tpu.core_type = #tpu.core_type<tc>} {
    %c0_i32 = arith.constant 0 : i32
    %0 = tpu.memref_slice %arg11[%c0_i32] : memref<3x!tpu.dma_semaphore, #tpu.memory_space<semaphore_mem>> -> memref<1x!tpu.dma_semaphore, #tpu.memory_space<semaphore_mem>>
    %1 = tpu.memref_squeeze %0 : memref<1x!tpu.dma_semaphore, #tpu.memory_space<semaphore_mem>> -> memref<!tpu.dma_semaphore, #tpu.memory_space<semaphore_mem>>
    tpu.enqueue_dma source(%arg4 : memref<2x64x256xbf16, #tpu.memory_space<any>>) target(%arg8 : memref<2x64x256xbf16, #tpu.memory_space<vmem>>) target_semaphore(%1 : memref<!tpu.dma_semaphore, #tpu.memory_space<semaphore_mem>>)
    %c1_i32 = arith.constant 1 : i32
    %2 = tpu.memref_slice %arg11[%c1_i32] : memref<3x!tpu.dma_semaphore, #tpu.memory_space<semaphore_mem>> -> memref<1x!tpu.dma_semaphore, #tpu.memory_space<semaphore_mem>>
    %3 = tpu.memref_squeeze %2 : memref<1x!tpu.dma_semaphore, #tpu.memory_space<semaphore_mem>> -> memref<!tpu.dma_semaphore, #tpu.memory_space<semaphore_mem>>
    tpu.enqueue_dma source(%arg5 : memref<2x256x64xbf16, #tpu.memory_space<any>>) target(%arg9 : memref<2x256x64xbf16, #tpu.memory_space<vmem>>) target_semaphore(%3 : memref<!tpu.dma_semaphore, #tpu.memory_space<semaphore_mem>>)
    %c2_i32 = arith.constant 2 : i32
    %4 = tpu.memref_slice %arg11[%c2_i32] : memref<3x!tpu.dma_semaphore, #tpu.memory_space<semaphore_mem>> -> memref<1x!tpu.dma_semaphore, #tpu.memory_space<semaphore_mem>>
    %5 = tpu.memref_squeeze %4 : memref<1x!tpu.dma_semaphore, #tpu.memory_space<semaphore_mem>> -> memref<!tpu.dma_semaphore, #tpu.memory_space<semaphore_mem>>
    tpu.enqueue_dma source(%arg6 : memref<64x128xbf16, #tpu.memory_space<any>>) target(%arg10 : memref<64x128xbf16, #tpu.memory_space<vmem>>) target_semaphore(%5 : memref<!tpu.dma_semaphore, #tpu.memory_space<semaphore_mem>>)
    %c0 = arith.constant 0 : index
    %c0_0 = arith.constant 0 : index
    %6 = vector.load %arg0[%c0, %c0_0] : memref<8x32xf32, #tpu.memory_space<vmem>>, vector<8x32xf32>
    %c0_1 = arith.constant 0 : index
    %c0_2 = arith.constant 0 : index
    %c0_3 = arith.constant 0 : index
    %7 = vector.load %arg1[%c0_1, %c0_2, %c0_3] : memref<5x64x64xbf16, #tpu.memory_space<vmem>>, vector<1x64x64xbf16>
    %8 = vector.shape_cast %7 : vector<1x64x64xbf16> to vector<64x64xbf16>
    %9 = vector.extract_strided_slice %8 {offsets = [0, 0], sizes = [32, 64], strides = [1, 1]} : vector<64x64xbf16> to vector<32x64xbf16>
    %10 = arith.truncf %6 : vector<8x32xf32> to vector<8x32xbf16>
    %cst = arith.constant dense<0.000000e+00> : vector<8x64xf32>
    %11 = tpu.matmul %10, %9, %cst {dimension_numbers = #tpu.dot_dimension_numbers<[1], [0], [0], [1], [0, 0, 1, 1], [], []>} : vector<8x32xbf16>, vector<32x64xbf16>, vector<8x64xf32> -> vector<8x64xf32>
    %c0_4 = arith.constant 0 : index
    %c0_5 = arith.constant 0 : index
    %12 = vector.load %arg3[%c0_4, %c0_5] : memref<22x256xf32, #tpu.memory_space<vmem>>, vector<1x64xf32>
    %13 = vector.broadcast %12 : vector<1x64xf32> to vector<8x64xf32>
    %14 = arith.addf %11, %13 : vector<8x64xf32>
    %cst_6 = arith.constant 0.000000e+00 : f32
    %15 = vector.broadcast %cst_6 : f32 to vector<8x64xf32>
    %16 = arith.maximumf %14, %15 : vector<8x64xf32>
    %c0_7 = arith.constant 0 : index
    %c0_8 = arith.constant 0 : index
    %c0_9 = arith.constant 0 : index
    %17 = vector.load %arg2[%c0_7, %c0_8, %c0_9] : memref<2x64x256xbf16, #tpu.memory_space<vmem>>, vector<1x64x256xbf16>
    %18 = vector.shape_cast %17 : vector<1x64x256xbf16> to vector<64x256xbf16>
    %19 = arith.truncf %16 : vector<8x64xf32> to vector<8x64xbf16>
    %cst_10 = arith.constant dense<0.000000e+00> : vector<8x256xf32>
    %20 = tpu.matmul %19, %18, %cst_10 {dimension_numbers = #tpu.dot_dimension_numbers<[1], [0], [0], [1], [0, 0, 1, 1], [], []>} : vector<8x64xbf16>, vector<64x256xbf16>, vector<8x256xf32> -> vector<8x256xf32>
    %c1 = arith.constant 1 : index
    %c0_11 = arith.constant 0 : index
    %21 = vector.load %arg3[%c1, %c0_11] : memref<22x256xf32, #tpu.memory_space<vmem>>, vector<1x256xf32>
    %22 = vector.broadcast %21 : vector<1x256xf32> to vector<8x256xf32>
    %23 = arith.addf %20, %22 : vector<8x256xf32>
    %24 = vector.extract_strided_slice %23 {offsets = [0, 0], sizes = [8, 128], strides = [1, 1]} : vector<8x256xf32> to vector<8x128xf32>
    %25 = arith.negf %24 : vector<8x128xf32>
    %26 = math.exp %25 : vector<8x128xf32>
    %cst_12 = arith.constant 1.000000e+00 : f32
    %27 = vector.broadcast %cst_12 : f32 to vector<8x128xf32>
    %28 = arith.addf %27, %26 : vector<8x128xf32>
    %29 = arith.divf %27, %28 : vector<8x128xf32>
    %30 = vector.extract_strided_slice %23 {offsets = [0, 128], sizes = [8, 64], strides = [1, 1]} : vector<8x256xf32> to vector<8x64xf32>
    %31 = math.tanh %30 : vector<8x64xf32>
    %32 = vector.extract_strided_slice %29 {offsets = [0, 0], sizes = [8, 64], strides = [1, 1]} : vector<8x128xf32> to vector<8x64xf32>
    %c64_i32 = arith.constant 64 : i32
    %33 = tpu.dynamic_rotate %29 by %c64_i32 dim 1 : vector<8x128xf32>, i32 -> vector<8x128xf32>
    %34 = vector.extract_strided_slice %33 {offsets = [0, 0], sizes = [8, 64], strides = [1, 1]} : vector<8x128xf32> to vector<8x64xf32>
    %35 = arith.mulf %32, %31 : vector<8x64xf32>
    %36 = math.tanh %35 : vector<8x64xf32>
    %37 = arith.mulf %34, %36 : vector<8x64xf32>
    %38 = tpu.concatenate %37, %35 in 1 : vector<8x64xf32>, vector<8x64xf32> -> vector<8x128xf32>
    %c1_13 = arith.constant 1 : index
    %c0_14 = arith.constant 0 : index
    %c0_15 = arith.constant 0 : index
    %39 = vector.load %arg7[%c1_13, %c0_14, %c0_15] : memref<3x8x128xf32, #tpu.memory_space<vmem>>, vector<1x8x128xf32>
    %40 = vector.shape_cast %39 : vector<1x8x128xf32> to vector<8x128xf32>
    %41 = vector.shape_cast %38 : vector<8x128xf32> to vector<1x8x128xf32>
    tpu.vector_store %arg7[%c1_13, %c0_14, %c0_15], %41 {strides = array<i32>} : memref<3x8x128xf32, #tpu.memory_space<vmem>>, vector<1x8x128xf32>,
    %c1_16 = arith.constant 1 : index
    %c0_17 = arith.constant 0 : index
    %c0_18 = arith.constant 0 : index
    %42 = vector.load %arg2[%c1_16, %c0_17, %c0_18] : memref<2x64x256xbf16, #tpu.memory_space<vmem>>, vector<1x64x256xbf16>
    %43 = vector.shape_cast %42 : vector<1x64x256xbf16> to vector<64x256xbf16>
    %44 = arith.truncf %37 : vector<8x64xf32> to vector<8x64xbf16>
    %cst_19 = arith.constant dense<0.000000e+00> : vector<8x256xf32>
    %45 = tpu.matmul %44, %43, %cst_19 {dimension_numbers = #tpu.dot_dimension_numbers<[1], [0], [0], [1], [0, 0, 1, 1], [], []>} : vector<8x64xbf16>, vector<64x256xbf16>, vector<8x256xf32> -> vector<8x256xf32>
    %c2 = arith.constant 2 : index
    %c0_20 = arith.constant 0 : index
    %46 = vector.load %arg3[%c2, %c0_20] : memref<22x256xf32, #tpu.memory_space<vmem>>, vector<1x256xf32>
    %47 = vector.broadcast %46 : vector<1x256xf32> to vector<8x256xf32>
    %48 = arith.addf %45, %47 : vector<8x256xf32>
    %49 = vector.extract_strided_slice %48 {offsets = [0, 0], sizes = [8, 128], strides = [1, 1]} : vector<8x256xf32> to vector<8x128xf32>
    %50 = arith.negf %49 : vector<8x128xf32>
    %51 = math.exp %50 : vector<8x128xf32>
    %cst_21 = arith.constant 1.000000e+00 : f32
    %52 = vector.broadcast %cst_21 : f32 to vector<8x128xf32>
    %53 = arith.addf %52, %51 : vector<8x128xf32>
    %54 = arith.divf %52, %53 : vector<8x128xf32>
    %55 = vector.extract_strided_slice %48 {offsets = [0, 128], sizes = [8, 64], strides = [1, 1]} : vector<8x256xf32> to vector<8x64xf32>
    %56 = math.tanh %55 : vector<8x64xf32>
    %57 = vector.extract_strided_slice %54 {offsets = [0, 0], sizes = [8, 64], strides = [1, 1]} : vector<8x128xf32> to vector<8x64xf32>
    %c64_i32_22 = arith.constant 64 : i32
    %58 = tpu.dynamic_rotate %54 by %c64_i32_22 dim 1 : vector<8x128xf32>, i32 -> vector<8x128xf32>
    %59 = vector.extract_strided_slice %58 {offsets = [0, 0], sizes = [8, 64], strides = [1, 1]} : vector<8x128xf32> to vector<8x64xf32>
    %60 = arith.mulf %57, %56 : vector<8x64xf32>
    %61 = math.tanh %60 : vector<8x64xf32>
    %62 = arith.mulf %59, %61 : vector<8x64xf32>
    %63 = tpu.concatenate %62, %60 in 1 : vector<8x64xf32>, vector<8x64xf32> -> vector<8x128xf32>
    %c2_23 = arith.constant 2 : index
    %c0_24 = arith.constant 0 : index
    %c0_25 = arith.constant 0 : index
    %64 = vector.load %arg7[%c2_23, %c0_24, %c0_25] : memref<3x8x128xf32, #tpu.memory_space<vmem>>, vector<1x8x128xf32>
    %65 = vector.shape_cast %64 : vector<1x8x128xf32> to vector<8x128xf32>
    %66 = vector.shape_cast %63 : vector<8x128xf32> to vector<1x8x128xf32>
    tpu.vector_store %arg7[%c2_23, %c0_24, %c0_25], %66 {strides = array<i32>} : memref<3x8x128xf32, #tpu.memory_space<vmem>>, vector<1x8x128xf32>,
    %c0_i32_26 = arith.constant 0 : i32
    %67 = tpu.memref_slice %arg11[%c0_i32_26] : memref<3x!tpu.dma_semaphore, #tpu.memory_space<semaphore_mem>> -> memref<1x!tpu.dma_semaphore, #tpu.memory_space<semaphore_mem>>
    %68 = tpu.memref_squeeze %67 : memref<1x!tpu.dma_semaphore, #tpu.memory_space<semaphore_mem>> -> memref<!tpu.dma_semaphore, #tpu.memory_space<semaphore_mem>>
    tpu.wait_dma2 semaphore(%68 : memref<!tpu.dma_semaphore, #tpu.memory_space<semaphore_mem>>) src(%arg4 : memref<2x64x256xbf16, #tpu.memory_space<any>>) dst(%arg8 : memref<2x64x256xbf16, #tpu.memory_space<vmem>>)
    %c1_i32_27 = arith.constant 1 : i32
    %69 = tpu.memref_slice %arg11[%c1_i32_27] : memref<3x!tpu.dma_semaphore, #tpu.memory_space<semaphore_mem>> -> memref<1x!tpu.dma_semaphore, #tpu.memory_space<semaphore_mem>>
    %70 = tpu.memref_squeeze %69 : memref<1x!tpu.dma_semaphore, #tpu.memory_space<semaphore_mem>> -> memref<!tpu.dma_semaphore, #tpu.memory_space<semaphore_mem>>
    tpu.wait_dma2 semaphore(%70 : memref<!tpu.dma_semaphore, #tpu.memory_space<semaphore_mem>>) src(%arg5 : memref<2x256x64xbf16, #tpu.memory_space<any>>) dst(%arg9 : memref<2x256x64xbf16, #tpu.memory_space<vmem>>)
    %c2_i32_28 = arith.constant 2 : i32
    %71 = tpu.memref_slice %arg11[%c2_i32_28] : memref<3x!tpu.dma_semaphore, #tpu.memory_space<semaphore_mem>> -> memref<1x!tpu.dma_semaphore, #tpu.memory_space<semaphore_mem>>
    %72 = tpu.memref_squeeze %71 : memref<1x!tpu.dma_semaphore, #tpu.memory_space<semaphore_mem>> -> memref<!tpu.dma_semaphore, #tpu.memory_space<semaphore_mem>>
    tpu.wait_dma2 semaphore(%72 : memref<!tpu.dma_semaphore, #tpu.memory_space<semaphore_mem>>) src(%arg6 : memref<64x128xbf16, #tpu.memory_space<any>>) dst(%arg10 : memref<64x128xbf16, #tpu.memory_space<vmem>>)
    %c1_29 = arith.constant 1 : index
    %c0_30 = arith.constant 0 : index
    %c0_31 = arith.constant 0 : index
    %73 = vector.load %arg1[%c1_29, %c0_30, %c0_31] : memref<5x64x64xbf16, #tpu.memory_space<vmem>>, vector<1x64x64xbf16>
    %74 = vector.shape_cast %73 : vector<1x64x64xbf16> to vector<64x64xbf16>
    %75 = arith.truncf %62 : vector<8x64xf32> to vector<8x64xbf16>
    %cst_32 = arith.constant dense<0.000000e+00> : vector<8x64xf32>
    %76 = tpu.matmul %75, %74, %cst_32 {dimension_numbers = #tpu.dot_dimension_numbers<[1], [0], [0], [1], [0, 0, 1, 1], [], []>} : vector<8x64xbf16>, vector<64x64xbf16>, vector<8x64xf32> -> vector<8x64xf32>
    %c3 = arith.constant 3 : index
    %c0_33 = arith.constant 0 : index
    %77 = vector.load %arg3[%c3, %c0_33] : memref<22x256xf32, #tpu.memory_space<vmem>>, vector<1x64xf32>
    %78 = vector.broadcast %77 : vector<1x64xf32> to vector<8x64xf32>
    %79 = arith.addf %76, %78 : vector<8x64xf32>
    %80 = arith.addf %62, %79 : vector<8x64xf32>
    %c4 = arith.constant 4 : index
    %c0_34 = arith.constant 0 : index
    %81 = vector.load %arg3[%c4, %c0_34] : memref<22x256xf32, #tpu.memory_space<vmem>>, vector<1x64xf32>
    %c5 = arith.constant 5 : index
    %c0_35 = arith.constant 0 : index
    %82 = vector.load %arg3[%c5, %c0_35] : memref<22x256xf32, #tpu.memory_space<vmem>>, vector<1x64xf32>
    %cst_36 = arith.constant dense<0.000000e+00> : vector<8xf32>
    %83 = vector.multi_reduction <add>, %80, %cst_36 [1] : vector<8x64xf32> to vector<8xf32>
    %84 = vector.shape_cast %83 : vector<8xf32> to vector<8x1xf32>
    %cst_37 = arith.constant 6.400000e+01 : f32
    %85 = vector.broadcast %cst_37 : f32 to vector<8x1xf32>
    %86 = arith.divf %84, %85 : vector<8x1xf32>
    %87 = vector.broadcast %86 : vector<8x1xf32> to vector<8x64xf32>
    %88 = arith.subf %80, %87 : vector<8x64xf32>
    %89 = arith.mulf %88, %88 : vector<8x64xf32>
    %cst_38 = arith.constant dense<0.000000e+00> : vector<8xf32>
    %90 = vector.multi_reduction <add>, %89, %cst_38 [1] : vector<8x64xf32> to vector<8xf32>
    %91 = vector.shape_cast %90 : vector<8xf32> to vector<8x1xf32>
    %cst_39 = arith.constant 6.400000e+01 : f32
    %92 = vector.broadcast %cst_39 : f32 to vector<8x1xf32>
    %93 = arith.divf %91, %92 : vector<8x1xf32>
    %94 = vector.broadcast %86 : vector<8x1xf32> to vector<8x64xf32>
    %95 = arith.subf %80, %94 : vector<8x64xf32>
    %cst_40 = arith.constant 9.99999974E-6 : f32
    %96 = vector.broadcast %cst_40 : f32 to vector<8x1xf32>
    %97 = arith.addf %93, %96 : vector<8x1xf32>
    %98 = math.rsqrt %97 : vector<8x1xf32>
    %99 = vector.broadcast %98 : vector<8x1xf32> to vector<8x64xf32>
    %100 = arith.mulf %95, %99 : vector<8x64xf32>
    %101 = vector.broadcast %81 : vector<1x64xf32> to vector<8x64xf32>
    %102 = arith.mulf %100, %101 : vector<8x64xf32>
    %103 = vector.broadcast %82 : vector<1x64xf32> to vector<8x64xf32>
    %104 = arith.addf %102, %103 : vector<8x64xf32>
    %c0_41 = arith.constant 0 : index
    %c0_42 = arith.constant 0 : index
    %c0_43 = arith.constant 0 : index
    %105 = vector.load %arg8[%c0_41, %c0_42, %c0_43] : memref<2x64x256xbf16, #tpu.memory_space<vmem>>, vector<1x64x256xbf16>
    %106 = vector.shape_cast %105 : vector<1x64x256xbf16> to vector<64x256xbf16>
    %107 = arith.truncf %104 : vector<8x64xf32> to vector<8x64xbf16>
    %cst_44 = arith.constant dense<0.000000e+00> : vector<8x256xf32>
    %108 = tpu.matmul %107, %106, %cst_44 {dimension_numbers = #tpu.dot_dimension_numbers<[1], [0], [0], [1], [0, 0, 1, 1], [], []>} : vector<8x64xbf16>, vector<64x256xbf16>, vector<8x256xf32> -> vector<8x256xf32>
    %c6 = arith.constant 6 : index
    %c0_45 = arith.constant 0 : index
    %109 = vector.load %arg3[%c6, %c0_45] : memref<22x256xf32, #tpu.memory_space<vmem>>, vector<1x256xf32>
    %110 = vector.broadcast %109 : vector<1x256xf32> to vector<8x256xf32>
    %111 = arith.addf %108, %110 : vector<8x256xf32>
    %cst_46 = arith.constant 5.000000e-01 : f32
    %112 = vector.broadcast %cst_46 : f32 to vector<8x256xf32>
    %113 = arith.mulf %112, %111 : vector<8x256xf32>
    %cst_47 = arith.constant 4.471500e-02 : f32
    %114 = vector.broadcast %cst_47 : f32 to vector<8x256xf32>
    %115 = arith.mulf %114, %111 : vector<8x256xf32>
    %116 = arith.mulf %115, %111 : vector<8x256xf32>
    %117 = arith.mulf %116, %111 : vector<8x256xf32>
    %118 = arith.addf %111, %117 : vector<8x256xf32>
    %cst_48 = arith.constant 0.797884583 : f32
    %119 = vector.broadcast %cst_48 : f32 to vector<8x256xf32>
    %120 = arith.mulf %119, %118 : vector<8x256xf32>
    %121 = math.tanh %120 : vector<8x256xf32>
    %cst_49 = arith.constant 1.000000e+00 : f32
    %122 = vector.broadcast %cst_49 : f32 to vector<8x256xf32>
    %123 = arith.addf %122, %121 : vector<8x256xf32>
    %124 = arith.mulf %113, %123 : vector<8x256xf32>
    %c0_50 = arith.constant 0 : index
    %c0_51 = arith.constant 0 : index
    %c0_52 = arith.constant 0 : index
    %125 = vector.load %arg9[%c0_50, %c0_51, %c0_52] : memref<2x256x64xbf16, #tpu.memory_space<vmem>>, vector<1x256x64xbf16>
    %126 = vector.shape_cast %125 : vector<1x256x64xbf16> to vector<256x64xbf16>
    %127 = arith.truncf %124 : vector<8x256xf32> to vector<8x256xbf16>
    %cst_53 = arith.constant dense<0.000000e+00> : vector<8x64xf32>
    %128 = tpu.matmul %127, %126, %cst_53 {dimension_numbers = #tpu.dot_dimension_numbers<[1], [0], [0], [1], [0, 0, 1, 1], [], []>} : vector<8x256xbf16>, vector<256x64xbf16>, vector<8x64xf32> -> vector<8x64xf32>
    %c7 = arith.constant 7 : index
    %c0_54 = arith.constant 0 : index
    %129 = vector.load %arg3[%c7, %c0_54] : memref<22x256xf32, #tpu.memory_space<vmem>>, vector<1x64xf32>
    %130 = vector.broadcast %129 : vector<1x64xf32> to vector<8x64xf32>
    %131 = arith.addf %128, %130 : vector<8x64xf32>
    %132 = arith.addf %104, %131 : vector<8x64xf32>
    %c8 = arith.constant 8 : index
    %c0_55 = arith.constant 0 : index
    %133 = vector.load %arg3[%c8, %c0_55] : memref<22x256xf32, #tpu.memory_space<vmem>>, vector<1x64xf32>
    %c9 = arith.constant 9 : index
    %c0_56 = arith.constant 0 : index
    %134 = vector.load %arg3[%c9, %c0_56] : memref<22x256xf32, #tpu.memory_space<vmem>>, vector<1x64xf32>
    %cst_57 = arith.constant dense<0.000000e+00> : vector<8xf32>
    %135 = vector.multi_reduction <add>, %132, %cst_57 [1] : vector<8x64xf32> to vector<8xf32>
    %136 = vector.shape_cast %135 : vector<8xf32> to vector<8x1xf32>
    %cst_58 = arith.constant 6.400000e+01 : f32
    %137 = vector.broadcast %cst_58 : f32 to vector<8x1xf32>
    %138 = arith.divf %136, %137 : vector<8x1xf32>
    %139 = vector.broadcast %138 : vector<8x1xf32> to vector<8x64xf32>
    %140 = arith.subf %132, %139 : vector<8x64xf32>
    %141 = arith.mulf %140, %140 : vector<8x64xf32>
    %cst_59 = arith.constant dense<0.000000e+00> : vector<8xf32>
    %142 = vector.multi_reduction <add>, %141, %cst_59 [1] : vector<8x64xf32> to vector<8xf32>
    %143 = vector.shape_cast %142 : vector<8xf32> to vector<8x1xf32>
    %cst_60 = arith.constant 6.400000e+01 : f32
    %144 = vector.broadcast %cst_60 : f32 to vector<8x1xf32>
    %145 = arith.divf %143, %144 : vector<8x1xf32>
    %146 = vector.broadcast %138 : vector<8x1xf32> to vector<8x64xf32>
    %147 = arith.subf %132, %146 : vector<8x64xf32>
    %cst_61 = arith.constant 9.99999974E-6 : f32
    %148 = vector.broadcast %cst_61 : f32 to vector<8x1xf32>
    %149 = arith.addf %145, %148 : vector<8x1xf32>
    %150 = math.rsqrt %149 : vector<8x1xf32>
    %151 = vector.broadcast %150 : vector<8x1xf32> to vector<8x64xf32>
    %152 = arith.mulf %147, %151 : vector<8x64xf32>
    %153 = vector.broadcast %133 : vector<1x64xf32> to vector<8x64xf32>
    %154 = arith.mulf %152, %153 : vector<8x64xf32>
    %155 = vector.broadcast %134 : vector<1x64xf32> to vector<8x64xf32>
    %156 = arith.addf %154, %155 : vector<8x64xf32>
    %c2_62 = arith.constant 2 : index
    %c0_63 = arith.constant 0 : index
    %c0_64 = arith.constant 0 : index
    %157 = vector.load %arg1[%c2_62, %c0_63, %c0_64] : memref<5x64x64xbf16, #tpu.memory_space<vmem>>, vector<1x64x64xbf16>
    %158 = vector.shape_cast %157 : vector<1x64x64xbf16> to vector<64x64xbf16>
    %159 = arith.truncf %156 : vector<8x64xf32> to vector<8x64xbf16>
    %cst_65 = arith.constant dense<0.000000e+00> : vector<8x64xf32>
    %160 = tpu.matmul %159, %158, %cst_65 {dimension_numbers = #tpu.dot_dimension_numbers<[1], [0], [0], [1], [0, 0, 1, 1], [], []>} : vector<8x64xbf16>, vector<64x64xbf16>, vector<8x64xf32> -> vector<8x64xf32>
    %c10 = arith.constant 10 : index
    %c0_66 = arith.constant 0 : index
    %161 = vector.load %arg3[%c10, %c0_66] : memref<22x256xf32, #tpu.memory_space<vmem>>, vector<1x64xf32>
    %162 = vector.broadcast %161 : vector<1x64xf32> to vector<8x64xf32>
    %163 = arith.addf %160, %162 : vector<8x64xf32>
    %164 = arith.addf %156, %163 : vector<8x64xf32>
    %c11 = arith.constant 11 : index
    %c0_67 = arith.constant 0 : index
    %165 = vector.load %arg3[%c11, %c0_67] : memref<22x256xf32, #tpu.memory_space<vmem>>, vector<1x64xf32>
    %c12 = arith.constant 12 : index
    %c0_68 = arith.constant 0 : index
    %166 = vector.load %arg3[%c12, %c0_68] : memref<22x256xf32, #tpu.memory_space<vmem>>, vector<1x64xf32>
    %cst_69 = arith.constant dense<0.000000e+00> : vector<8xf32>
    %167 = vector.multi_reduction <add>, %164, %cst_69 [1] : vector<8x64xf32> to vector<8xf32>
    %168 = vector.shape_cast %167 : vector<8xf32> to vector<8x1xf32>
    %cst_70 = arith.constant 6.400000e+01 : f32
    %169 = vector.broadcast %cst_70 : f32 to vector<8x1xf32>
    %170 = arith.divf %168, %169 : vector<8x1xf32>
    %171 = vector.broadcast %170 : vector<8x1xf32> to vector<8x64xf32>
    %172 = arith.subf %164, %171 : vector<8x64xf32>
    %173 = arith.mulf %172, %172 : vector<8x64xf32>
    %cst_71 = arith.constant dense<0.000000e+00> : vector<8xf32>
    %174 = vector.multi_reduction <add>, %173, %cst_71 [1] : vector<8x64xf32> to vector<8xf32>
    %175 = vector.shape_cast %174 : vector<8xf32> to vector<8x1xf32>
    %cst_72 = arith.constant 6.400000e+01 : f32
    %176 = vector.broadcast %cst_72 : f32 to vector<8x1xf32>
    %177 = arith.divf %175, %176 : vector<8x1xf32>
    %178 = vector.broadcast %170 : vector<8x1xf32> to vector<8x64xf32>
    %179 = arith.subf %164, %178 : vector<8x64xf32>
    %cst_73 = arith.constant 9.99999974E-6 : f32
    %180 = vector.broadcast %cst_73 : f32 to vector<8x1xf32>
    %181 = arith.addf %177, %180 : vector<8x1xf32>
    %182 = math.rsqrt %181 : vector<8x1xf32>
    %183 = vector.broadcast %182 : vector<8x1xf32> to vector<8x64xf32>
    %184 = arith.mulf %179, %183 : vector<8x64xf32>
    %185 = vector.broadcast %165 : vector<1x64xf32> to vector<8x64xf32>
    %186 = arith.mulf %184, %185 : vector<8x64xf32>
    %187 = vector.broadcast %166 : vector<1x64xf32> to vector<8x64xf32>
    %188 = arith.addf %186, %187 : vector<8x64xf32>
    %c1_74 = arith.constant 1 : index
    %c0_75 = arith.constant 0 : index
    %c0_76 = arith.constant 0 : index
    %189 = vector.load %arg8[%c1_74, %c0_75, %c0_76] : memref<2x64x256xbf16, #tpu.memory_space<vmem>>, vector<1x64x256xbf16>
    %190 = vector.shape_cast %189 : vector<1x64x256xbf16> to vector<64x256xbf16>
    %191 = arith.truncf %188 : vector<8x64xf32> to vector<8x64xbf16>
    %cst_77 = arith.constant dense<0.000000e+00> : vector<8x256xf32>
    %192 = tpu.matmul %191, %190, %cst_77 {dimension_numbers = #tpu.dot_dimension_numbers<[1], [0], [0], [1], [0, 0, 1, 1], [], []>} : vector<8x64xbf16>, vector<64x256xbf16>, vector<8x256xf32> -> vector<8x256xf32>
    %c13 = arith.constant 13 : index
    %c0_78 = arith.constant 0 : index
    %193 = vector.load %arg3[%c13, %c0_78] : memref<22x256xf32, #tpu.memory_space<vmem>>, vector<1x256xf32>
    %194 = vector.broadcast %193 : vector<1x256xf32> to vector<8x256xf32>
    %195 = arith.addf %192, %194 : vector<8x256xf32>
    %cst_79 = arith.constant 5.000000e-01 : f32
    %196 = vector.broadcast %cst_79 : f32 to vector<8x256xf32>
    %197 = arith.mulf %196, %195 : vector<8x256xf32>
    %cst_80 = arith.constant 4.471500e-02 : f32
    %198 = vector.broadcast %cst_80 : f32 to vector<8x256xf32>
    %199 = arith.mulf %198, %195 : vector<8x256xf32>
    %200 = arith.mulf %199, %195 : vector<8x256xf32>
    %201 = arith.mulf %200, %195 : vector<8x256xf32>
    %202 = arith.addf %195, %201 : vector<8x256xf32>
    %cst_81 = arith.constant 0.797884583 : f32
    %203 = vector.broadcast %cst_81 : f32 to vector<8x256xf32>
    %204 = arith.mulf %203, %202 : vector<8x256xf32>
    %205 = math.tanh %204 : vector<8x256xf32>
    %cst_82 = arith.constant 1.000000e+00 : f32
    %206 = vector.broadcast %cst_82 : f32 to vector<8x256xf32>
    %207 = arith.addf %206, %205 : vector<8x256xf32>
    %208 = arith.mulf %197, %207 : vector<8x256xf32>
    %c1_83 = arith.constant 1 : index
    %c0_84 = arith.constant 0 : index
    %c0_85 = arith.constant 0 : index
    %209 = vector.load %arg9[%c1_83, %c0_84, %c0_85] : memref<2x256x64xbf16, #tpu.memory_space<vmem>>, vector<1x256x64xbf16>
    %210 = vector.shape_cast %209 : vector<1x256x64xbf16> to vector<256x64xbf16>
    %211 = arith.truncf %208 : vector<8x256xf32> to vector<8x256xbf16>
    %cst_86 = arith.constant dense<0.000000e+00> : vector<8x64xf32>
    %212 = tpu.matmul %211, %210, %cst_86 {dimension_numbers = #tpu.dot_dimension_numbers<[1], [0], [0], [1], [0, 0, 1, 1], [], []>} : vector<8x256xbf16>, vector<256x64xbf16>, vector<8x64xf32> -> vector<8x64xf32>
    %c14 = arith.constant 14 : index
    %c0_87 = arith.constant 0 : index
    %213 = vector.load %arg3[%c14, %c0_87] : memref<22x256xf32, #tpu.memory_space<vmem>>, vector<1x64xf32>
    %214 = vector.broadcast %213 : vector<1x64xf32> to vector<8x64xf32>
    %215 = arith.addf %212, %214 : vector<8x64xf32>
    %216 = arith.addf %188, %215 : vector<8x64xf32>
    %c15 = arith.constant 15 : index
    %c0_88 = arith.constant 0 : index
    %217 = vector.load %arg3[%c15, %c0_88] : memref<22x256xf32, #tpu.memory_space<vmem>>, vector<1x64xf32>
    %c16 = arith.constant 16 : index
    %c0_89 = arith.constant 0 : index
    %218 = vector.load %arg3[%c16, %c0_89] : memref<22x256xf32, #tpu.memory_space<vmem>>, vector<1x64xf32>
    %cst_90 = arith.constant dense<0.000000e+00> : vector<8xf32>
    %219 = vector.multi_reduction <add>, %216, %cst_90 [1] : vector<8x64xf32> to vector<8xf32>
    %220 = vector.shape_cast %219 : vector<8xf32> to vector<8x1xf32>
    %cst_91 = arith.constant 6.400000e+01 : f32
    %221 = vector.broadcast %cst_91 : f32 to vector<8x1xf32>
    %222 = arith.divf %220, %221 : vector<8x1xf32>
    %223 = vector.broadcast %222 : vector<8x1xf32> to vector<8x64xf32>
    %224 = arith.subf %216, %223 : vector<8x64xf32>
    %225 = arith.mulf %224, %224 : vector<8x64xf32>
    %cst_92 = arith.constant dense<0.000000e+00> : vector<8xf32>
    %226 = vector.multi_reduction <add>, %225, %cst_92 [1] : vector<8x64xf32> to vector<8xf32>
    %227 = vector.shape_cast %226 : vector<8xf32> to vector<8x1xf32>
    %cst_93 = arith.constant 6.400000e+01 : f32
    %228 = vector.broadcast %cst_93 : f32 to vector<8x1xf32>
    %229 = arith.divf %227, %228 : vector<8x1xf32>
    %230 = vector.broadcast %222 : vector<8x1xf32> to vector<8x64xf32>
    %231 = arith.subf %216, %230 : vector<8x64xf32>
    %cst_94 = arith.constant 9.99999974E-6 : f32
    %232 = vector.broadcast %cst_94 : f32 to vector<8x1xf32>
    %233 = arith.addf %229, %232 : vector<8x1xf32>
    %234 = math.rsqrt %233 : vector<8x1xf32>
    %235 = vector.broadcast %234 : vector<8x1xf32> to vector<8x64xf32>
    %236 = arith.mulf %231, %235 : vector<8x64xf32>
    %237 = vector.broadcast %217 : vector<1x64xf32> to vector<8x64xf32>
    %238 = arith.mulf %236, %237 : vector<8x64xf32>
    %239 = vector.broadcast %218 : vector<1x64xf32> to vector<8x64xf32>
    %240 = arith.addf %238, %239 : vector<8x64xf32>
    %c3_95 = arith.constant 3 : index
    %c0_96 = arith.constant 0 : index
    %c0_97 = arith.constant 0 : index
    %241 = vector.load %arg1[%c3_95, %c0_96, %c0_97] : memref<5x64x64xbf16, #tpu.memory_space<vmem>>, vector<1x64x64xbf16>
    %242 = vector.shape_cast %241 : vector<1x64x64xbf16> to vector<64x64xbf16>
    %243 = arith.truncf %240 : vector<8x64xf32> to vector<8x64xbf16>
    %cst_98 = arith.constant dense<0.000000e+00> : vector<8x64xf32>
    %244 = tpu.matmul %243, %242, %cst_98 {dimension_numbers = #tpu.dot_dimension_numbers<[1], [0], [0], [1], [0, 0, 1, 1], [], []>} : vector<8x64xbf16>, vector<64x64xbf16>, vector<8x64xf32> -> vector<8x64xf32>
    %c17 = arith.constant 17 : index
    %c0_99 = arith.constant 0 : index
    %245 = vector.load %arg3[%c17, %c0_99] : memref<22x256xf32, #tpu.memory_space<vmem>>, vector<1x64xf32>
    %246 = vector.broadcast %245 : vector<1x64xf32> to vector<8x64xf32>
    %247 = arith.addf %244, %246 : vector<8x64xf32>
    %cst_100 = arith.constant 0.000000e+00 : f32
    %248 = vector.broadcast %cst_100 : f32 to vector<8x64xf32>
    %249 = arith.maximumf %247, %248 : vector<8x64xf32>
    %c4_101 = arith.constant 4 : index
    %c0_102 = arith.constant 0 : index
    %c0_103 = arith.constant 0 : index
    %250 = vector.load %arg1[%c4_101, %c0_102, %c0_103] : memref<5x64x64xbf16, #tpu.memory_space<vmem>>, vector<1x64x64xbf16>
    %251 = vector.shape_cast %250 : vector<1x64x64xbf16> to vector<64x64xbf16>
    %252 = arith.truncf %249 : vector<8x64xf32> to vector<8x64xbf16>
    %cst_104 = arith.constant dense<0.000000e+00> : vector<8x64xf32>
    %253 = tpu.matmul %252, %251, %cst_104 {dimension_numbers = #tpu.dot_dimension_numbers<[1], [0], [0], [1], [0, 0, 1, 1], [], []>} : vector<8x64xbf16>, vector<64x64xbf16>, vector<8x64xf32> -> vector<8x64xf32>
    %c18 = arith.constant 18 : index
    %c0_105 = arith.constant 0 : index
    %254 = vector.load %arg3[%c18, %c0_105] : memref<22x256xf32, #tpu.memory_space<vmem>>, vector<1x64xf32>
    %255 = vector.broadcast %254 : vector<1x64xf32> to vector<8x64xf32>
    %256 = arith.addf %253, %255 : vector<8x64xf32>
    %cst_106 = arith.constant 0.000000e+00 : f32
    %257 = vector.broadcast %cst_106 : f32 to vector<8x64xf32>
    %258 = arith.maximumf %256, %257 : vector<8x64xf32>
    %c0_107 = arith.constant 0 : index
    %c0_108 = arith.constant 0 : index
    %259 = vector.load %arg10[%c0_107, %c0_108] : memref<64x128xbf16, #tpu.memory_space<vmem>>, vector<64x128xbf16>
    %260 = arith.truncf %258 : vector<8x64xf32> to vector<8x64xbf16>
    %cst_109 = arith.constant dense<0.000000e+00> : vector<8x128xf32>
    %261 = tpu.matmul %260, %259, %cst_109 {dimension_numbers = #tpu.dot_dimension_numbers<[1], [0], [0], [1], [0, 0, 1, 1], [], []>} : vector<8x64xbf16>, vector<64x128xbf16>, vector<8x128xf32> -> vector<8x128xf32>
    %c19 = arith.constant 19 : index
    %c0_110 = arith.constant 0 : index
    %262 = vector.load %arg3[%c19, %c0_110] : memref<22x256xf32, #tpu.memory_space<vmem>>, vector<1x128xf32>
    %263 = vector.broadcast %262 : vector<1x128xf32> to vector<8x128xf32>
    %264 = arith.addf %261, %263 : vector<8x128xf32>
    %c20 = arith.constant 20 : index
    %c0_111 = arith.constant 0 : index
    %265 = vector.load %arg3[%c20, %c0_111] : memref<22x256xf32, #tpu.memory_space<vmem>>, vector<1x128xf32>
    %266 = vector.broadcast %265 : vector<1x128xf32> to vector<8x128xf32>
    %267 = arith.maximumf %264, %266 : vector<8x128xf32>
    %c21 = arith.constant 21 : index
    %c0_112 = arith.constant 0 : index
    %268 = vector.load %arg3[%c21, %c0_112] : memref<22x256xf32, #tpu.memory_space<vmem>>, vector<1x128xf32>
    %269 = vector.broadcast %268 : vector<1x128xf32> to vector<8x128xf32>
    %270 = arith.minimumf %267, %269 : vector<8x128xf32>
    %c0_113 = arith.constant 0 : index
    %c0_114 = arith.constant 0 : index
    %c0_115 = arith.constant 0 : index
    %271 = vector.load %arg7[%c0_113, %c0_114, %c0_115] : memref<3x8x128xf32, #tpu.memory_space<vmem>>, vector<1x8x128xf32>
    %272 = vector.shape_cast %271 : vector<1x8x128xf32> to vector<8x128xf32>
    %273 = vector.shape_cast %270 : vector<8x128xf32> to vector<1x8x128xf32>
    tpu.vector_store %arg7[%c0_113, %c0_114, %c0_115], %273 {strides = array<i32>} : memref<3x8x128xf32, #tpu.memory_space<vmem>>, vector<1x8x128xf32>,
    return
  }
}

</mosaic_0001>

<bundles_post_ra>
// kernel: _actor_forward_pallas.1
= control target key start
LH: loop header
LB: loop body
LE: loop exit
PB: predicated region body
PF: predicated region fallthrough
CT: control target
= control target key end

     0   :  { %s25_s24 = sld [smem:[#allocation0]]   ;;  %s1636_s25 = smov [#allocation2]   ;;  %s2161_s0 = inlined_call_operand.vmem [shape: f32[8,32], index: 0, kind: input, shape index: {}]   ;;  %s2162_s1 = inlined_call_operand.vmem [shape: bf16[5,64,64], index: 1, kind: input, shape index: {}]   ;;  %s2163_s2 = inlined_call_operand.vmem [shape: bf16[2,64,256], index: 2, kind: input, shape index: {}]   ;;  %s2164_s3 = inlined_call_operand.vmem [shape: f32[22,256], index: 3, kind: input, shape index: {}]   ;;  %s2165_s4 = inlined_call_operand.hbm [shape: bf16[2,64,256], index: 4, kind: input, shape index: {}]   ;;  %s2166_s5 = inlined_call_operand.vmem [shape: bf16[2,256,64], index: 5, kind: input, shape index: {}]   ;;  %s2167_s6 = inlined_call_operand.vmem [shape: bf16[64,128], index: 6, kind: input, shape index: {}]   ;;  %s2168_s7 = inlined_call_operand.vmem [shape: f32[3,8,128], index: 7, kind: output, shape index: {}]  }
   0x1   :  { %s33_s26 = sshll.u32 %s1636_s25, 4  ;;  %s1637_s27 = smov 256   ;;  %s34_s26 = int_to_ptr.vmem [resolvable:$true] %s33_s26 }
   0x2   :  { %37 = sst [smem:[#allocation7]] %s1637_s27  ;;  %s1638_s28 = smov 2  }
   0x3   :  { %39 = sst [smem:[#allocation7 + $0x1]] %s1637_s27  ;;  %s1639_s29 = smov 64  }
   0x4   :  { %41 = sst [smem:[#allocation7 + $0x2]] %s1638_s28  ;;  %s1640_s8 = smov 128  }
   0x5   :  { %43 = sst [smem:[#allocation7 + $0x3]] %s1639_s29  ;;  %s1641_s10 = smov 4  }
   0x6   :  { %s1308_s30 = sshll.u32 %s25_s24, 26  ;;  %45 = sst [smem:[#allocation7 + $0x4]] %s1640_s8 }
   0x7   :  { %s1309_s9 = sadd.s32 134217728, %s1308_s30  ;;  %47 = sst [smem:[#allocation7 + $0x5]] %s1638_s28 }
   0x8   :  { %49 = sst [smem:[#allocation7 + $0x6]] %s1640_s8  ;;  %s1642_s11 = smov [#allocation5]  }
   0x9   :  { %51 = sst [smem:[#allocation7 + $0x7]] %s1639_s29  ;;  %s1643_s12 = smov [#allocation6]  }
   0xa   :  { %53 = sst [smem:[#allocation7 + $0x8]] %s1641_s10 }
   0xb   :  { %55 = dma.general %s2165_s4, 2048, %s34_s26, %s1642_s11, %s1643_s12, [#allocation7], %s1309_s9, 0  }
   0xc   :  { %v1695_v0 = vld [vmem:[%s2166_s5] sm:$0xff]  ;;  %v1700_v1 = vld [vmem:[%s2166_s5 + $0x8] sm:$0xff]  ;;  %v1705_v2 = vld [vmem:[%s2166_s5 + $0x10] sm:$0xff] }
   0xd   :  { %v1710_v3 = vld [vmem:[%s2166_s5 + $0x18] sm:$0xff]  ;;  %v1715_v4 = vld [vmem:[%s2166_s5 + $0x20] sm:$0xff]  ;;  %v1720_v5 = vld [vmem:[%s2166_s5 + $0x28] sm:$0xff] }
   0xe   :  { %v1725_v6 = vld [vmem:[%s2166_s5 + $0x30] sm:$0xff]  ;;  %v1730_v7 = vld [vmem:[%s2166_s5 + $0x38] sm:$0xff]  ;;  %v1735_v8 = vld [vmem:[%s2166_s5 + $0x40] sm:$0xff] }
   0xf   :  { %v1740_v9 = vld [vmem:[%s2166_s5 + $0x48] sm:$0xff]  ;;  %v1745_v10 = vld [vmem:[%s2166_s5 + $0x50] sm:$0xff]  ;;  %v1750_v11 = vld [vmem:[%s2166_s5 + $0x58] sm:$0xff] }
  0x10   :  { %v1755_v12 = vld [vmem:[%s2166_s5 + $0x60] sm:$0xff]  ;;  %v1760_v13 = vld [vmem:[%s2166_s5 + $0x68] sm:$0xff]  ;;  %v1765_v14 = vld [vmem:[%s2166_s5 + $0x70] sm:$0xff] }
  0x11   :  { %v1770_v15 = vld [vmem:[%s2166_s5 + $0x78] sm:$0xff]  ;;  %v1775_v16 = vld [vmem:[%s2166_s5 + $0x80] sm:$0xff]  ;;  %v1780_v17 = vld [vmem:[%s2166_s5 + $0x88] sm:$0xff] }
  0x12   :  { %v1785_v18 = vld [vmem:[%s2166_s5 + $0x90] sm:$0xff]  ;;  %v1790_v19 = vld [vmem:[%s2166_s5 + $0x98] sm:$0xff]  ;;  %v1795_v20 = vld [vmem:[%s2166_s5 + $0xa0] sm:$0xff] }
  0x13   :  { %v1800_v21 = vld [vmem:[%s2166_s5 + $0xa8] sm:$0xff]  ;;  %v1805_v22 = vld [vmem:[%s2166_s5 + $0xb0] sm:$0xff]  ;;  %v1810_v23 = vld [vmem:[%s2166_s5 + $0xb8] sm:$0xff] }
  0x14   :  { %v1815_v24 = vld [vmem:[%s2166_s5 + $0xc0] sm:$0xff]  ;;  %v1820_v25 = vld [vmem:[%s2166_s5 + $0xc8] sm:$0xff]  ;;  %v1825_v26 = vld [vmem:[%s2166_s5 + $0xd0] sm:$0xff] }
  0x15   :  { %v1830_v27 = vld [vmem:[%s2166_s5 + $0xd8] sm:$0xff]  ;;  %v1835_v28 = vld [vmem:[%s2166_s5 + $0xe0] sm:$0xff]  ;;  %v1840_v29 = vld [vmem:[%s2166_s5 + $0xe8] sm:$0xff] }
  0x16   :  { %v1845_v30 = vld [vmem:[%s2166_s5 + $0xf0] sm:$0xff]  ;;  %v1850_v31 = vld [vmem:[%s2166_s5 + $0xf8] sm:$0xff] }
  0x17   :  { %160 = vsyncadd [#allocation5 + $0x1], 4096  ;;  %v1855_v32 = vld [vmem:[%s2167_s6] sm:$0xff]  ;;  %v1860_v33 = vld [vmem:[%s2167_s6 + $0x8] sm:$0xff] }
  0x18   :  { %v1865_v34 = vld [vmem:[%s2167_s6 + $0x10] sm:$0xff]  ;;  %v1870_v35 = vld [vmem:[%s2167_s6 + $0x18] sm:$0xff] }
  0x19   :  { %209 = vsyncadd [#allocation5 + $0x2], 512  ;;  %v1556_v36 = vld [vmem:[%s2162_s1] sm:$0xff]   ;;  %v1644_v37 = vmov 0.0   ;;  %v1557_v38 = vld [vmem:[%s2162_s1 + $0x8] sm:$0xff]   ;;  %vm1645_vm0 = vmmov 0  }
  0x1a   :  { %1477 = vmatprep.subr.bf16.mxu0 %v1644_v37  ;;  %v210_v39 = vld [vmem:[%s2161_s0] sm:$0xff]  ;;  %1481 = vmatprep.mubr.msk.bf16.mxu0 %vm1645_vm0, %v1644_v37  ;;  %v1561_v42 = vld [vmem:[%s2163_s2 + $0x14] ss:$8 sps:$4 sm:$0xff]   ;;  %vm229_vm1 = vcmask 261120   ;;  %v1563_v44 = vld [vmem:[%s2163_s2 + $0x10] ss:$8 sps:$4 sm:$0xff]  }
  0x1b   :  { %1478 = vmatpush3.bf16.msra.mxu0 %v1556_v36  ;;  %v1558_v40 = vld [vmem:[%s2163_s2 + $0x4] ss:$8 sps:$4 sm:$0xff]   ;;  %v1560_v41 = vld [vmem:[%s2163_s2] ss:$8 sps:$4 sm:$0xff]   ;;  %v215_v43 = vpack.c.bf16 %v210_v39, %v210_v39  ;;  %v1567_v47 = vld [vmem:[%s2163_s2 + $0x34] ss:$8 sps:$4 sm:$0xff]   ;;  %v286_v36 = vlaneseq }
  0x1c   :  { %1479 = vmatprep.subr.bf16.mxu0 %v1644_v37  ;;  %340 = vmatprep.subr.bf16.mxu1 %v1558_v40  ;;  %v1564_v45 = vld [vmem:[%s2163_s2 + $0x24] ss:$8 sps:$4 sm:$0xff]   ;;  %v1566_v46 = vld [vmem:[%s2163_s2 + $0x20] ss:$8 sps:$4 sm:$0xff]   ;;  %v1569_v48 = vld [vmem:[%s2163_s2 + $0x30] ss:$8 sps:$4 sm:$0xff]  }
  0x1d   :  { %341 = vmatpush1.bf16.msra.mxu1 %v1560_v41  ;;  %v1646_v49 = vmov 0   ;;  %v216_v50 = vld [vmem:[%s2164_s3] ss:$0 sm:$0xff]  ;;  %vm336_vm2 = vcmask 523264   ;;  %v1572_v59 = vld [vmem:[%s2163_s2 + $0x44] ss:$8 sps:$4 sm:$0xff]  }
  0x1e   :  { %342 = vmatprep.subr.bf16.mxu1 %v1561_v42  ;;  %372 = vmatprep.mubr.bf16.mxu1 %v1646_v49  ;;  %v1570_v58 = vld [vmem:[%s2163_s2 + $0x40] ss:$8 sps:$4 sm:$0xff]   ;;  %v1575_v60 = vld [vmem:[%s2163_s2 + $0x54] ss:$8 sps:$4 sm:$0xff]   ;;  %v1573_v61 = vld [vmem:[%s2163_s2 + $0x50] ss:$8 sps:$4 sm:$0xff]  }
  0x1f   :  { %1480 = vmatpush3.bf16.msra.mxu0 %v1557_v38  ;;  %v1578_v62 = vld [vmem:[%s2163_s2 + $0x64] ss:$8 sps:$4 sm:$0xff]   ;;  %v1576_v63 = vld [vmem:[%s2163_s2 + $0x60] ss:$8 sps:$4 sm:$0xff]   ;;  %v287_v38 = vshrl.u32 %v286_v36, 7 }
  0x20   :  { %466 = vmatprep.subr.bf16.mxu0 %v1572_v59  ;;  %v1313_v40 = vld [vmem:[%s2164_s3 + $0x1] ss:$8 sm:$0x3] }
  0x21   :  { %343 = vmatpush1.bf16.msra.mxu1 %v1563_v44  ;;  %v1933_v39 = vsub.s32 0, %v287_v38 }
  0x22   :  { %1482 = vmatmul.mubr.msk.bf16.vlgmr.msra.gmra.mrb[0].mxu0 %vm229_vm1, %v215_v43  ;;  %344 = vmatprep.subr.bf16.mxu1 %v1564_v45 }
  0x23   :  { %498 = vmatprep.mubr.bf16.mxu0 %v1646_v49  ;;  %467 = vmatpush1.bf16.msra.mxu0 %v1570_v58  ;;  %v289_v41 = vrot.slane %v1313_v40, %v1933_v39 }
  0x24   :  { %468 = vmatprep.subr.bf16.mxu0 %v1575_v60 }
  0x25   :  { %345 = vmatpush1.bf16.msra.mxu1 %v1566_v46 }
  0x26   :  { %346 = vmatprep.subr.bf16.mxu1 %v1567_v47 }
  0x27   :  { %469 = vmatpush1.bf16.msra.mxu0 %v1573_v61 }
  0x28   :  { %470 = vmatprep.subr.bf16.mxu0 %v1578_v62 }
  0x29   :  { %347 = vmatpush1.bf16.msra.mxu1 %v1569_v48  ;;  %v1939_v48 = vsub.s32 1, %v287_v38  ;;  %v1333_v38 = vld [vmem:[%s2164_s3 + $0x2] ss:$8 sm:$0x3] }
  0x2b   :  { %471 = vmatpush1.bf16.msra.mxu0 %v1576_v63 }
  0xf5   :  { %v267_v51 = vpop.f32.mrb[0].mxu0 }
  0xf6   :  { %v268_v52 = vadd.f32 %v267_v51, %v216_v50  ;;  %v1483_v53 = vpop.f32.mrb[1].mxu0  ;;  %v293_v50 = vrot.slane %v1313_v40, %v1939_v48  ;;  %v416_v40 = vrot.slane %v1333_v38, %v1933_v39 }
  0xf7   :  { %v270_v54 = vpop.f32.mrb[2].mxu0 }
  0xf8   :  { %v273_v55 = vmax.f32 %v268_v52, 0.0  ;;  %v1484_v56 = vpop.f32.mrb[3].mxu0  ;;  %v1581_v52 = vld [vmem:[%s2163_s2 + $0x74] ss:$8 sps:$4 sm:$0xff]   ;;  %v1579_v54 = vld [vmem:[%s2163_s2 + $0x70] ss:$8 sps:$4 sm:$0xff]  }
  0xf9   :  { %472 = vmatprep.subr.bf16.mxu0 %v1581_v52 }
  0xfa   :  { %v282_v57 = vpack.c.bf16 %v273_v55, %v273_v55  ;;  %473 = vmatpush1.bf16.msra.mxu0 %v1579_v54 }
  0xfc   :  { %1322 = vmatmul.mubr.msk.bf16.vlgmr.msra.gmra.mrb[0].mxu1 %vm336_vm2, %v282_v57 }
 0x1cf   :  { %v374_v42 = vpop.f32.mrb[0].mxu1 }
 0x1d0   :  { %v375_v43 = vadd.f32 %v374_v42, %v289_v41  ;;  %v376_v44 = vpop.f32.mrb[1].mxu1 }
 0x1d1   :  { %v378_v45 = vpop.f32.mrb[2].mxu1  ;;  %v377_v51 = vadd.f32 %v376_v44, %v293_v50 }
 0x1d2   :  { %v1323_v46 = vmul.f32 -1.442695, %v375_v43  ;;  %v379_v47 = vpop.f32.mrb[3].mxu1 }
 0x1d3   :  { %v420_v47 = vrot.slane %v1333_v38, %v1939_v48 }
 0x1d4   :  { %1582 = vpow2.f32 %v1323_v46 }
 0x1d5   :  { %1584 = vtanh.f32 %v377_v51 }
 0x1de   :  { %v1583_v53 = vpop.eup %1582 }
 0x1df   :  { %v384_v55 = vadd.f32 1.0, %v1583_v53  ;;  %v1585_v56 = vpop.eup %1584 }
 0x1e1   :  { %1586 = vrcp.f32 %v384_v55 }
 0x1eb   :  { %v1587_v57 = vpop.eup %1586 }
 0x1ec   :  { %388 = vrot.lane.b32.xlu0 %v1587_v57, %s1639_s29  ;;  %v390_v58 = vmul.f32 %v1587_v57, %v1585_v56 }
 0x1ee   :  { %394 = vrot.lane.b32.xlu1 %v390_v58, %s1639_s29  ;;  %1588 = vtanh.f32 %v390_v58 }
 0x1f8   :  { %v1589_v59 = vpop.eup %1588 }
 0x25e   :  { %v389_v60 = vpop.permute.xlu0 %388 }
 0x25f   :  { %v392_v61 = vmul.f32 %v1589_v59, %v389_v60 }
 0x260   :  { %v395_v62 = vpop.permute.xlu1 %394 }
 0x261   :  { %v409_v63 = vpack.c.bf16 %v392_v61, %v392_v61  ;;  %v397_v36 = vsel %vm336_vm2, %v392_v61, %v395_v62 }
 0x262   :  { %1324 = vst [vmem:[%s2168_s7 + $0x8] sm:$0xff] %v397_v36 }
 0x263   :  { %1342 = vmatmul.mubr.msk.bf16.vlgmr.msra.gmra.mrb[4].mxu0 %vm336_vm2, %v409_v63 }
 0x336   :  { %v500_v41 = vpop.f32.mrb[4].mxu0 }
 0x337   :  { %v501_v42 = vadd.f32 %v500_v41, %v416_v40  ;;  %v502_v43 = vpop.f32.mrb[5].mxu0 }
 0x338   :  { %v504_v44 = vpop.f32.mrb[6].mxu0  ;;  %v503_v50 = vadd.f32 %v502_v43, %v420_v47 }
 0x339   :  { %v1343_v45 = vmul.f32 -1.442695, %v501_v42  ;;  %v505_v46 = vpop.f32.mrb[7].mxu0 }
 0x33b   :  { %1590 = vpow2.f32 %v1343_v45 }
 0x33c   :  { %1592 = vtanh.f32 %v503_v50 }
 0x345   :  { %v1591_v51 = vpop.eup %1590 }
 0x346   :  { %v510_v52 = vadd.f32 1.0, %v1591_v51  ;;  %v1593_v53 = vpop.eup %1592 }
 0x348   :  { %1594 = vrcp.f32 %v510_v52 }
 0x352   :  { %v1595_v54 = vpop.eup %1594 }
 0x353   :  { %514 = vrot.lane.b32.xlu0 %v1595_v54, %s1639_s29  ;;  %v516_v55 = vmul.f32 %v1595_v54, %v1593_v53 }
 0x355   :  { %520 = vrot.lane.b32.xlu1 %v516_v55, %s1639_s29  ;;  %1596 = vtanh.f32 %v516_v55 }
 0x35f   :  { %v1597_v56 = vpop.eup %1596 }
 0x3c5   :  { %v515_v57 = vpop.permute.xlu0 %514 }
 0x3c6   :  { %v518_v58 = vmul.f32 %v1597_v56, %v515_v57 }
 0x3c7   :  { %v521_v59 = vpop.permute.xlu1 %520 }
 0x3c8   :  { %v523_v60 = vsel %vm336_vm2, %v518_v58, %v521_v59 }
 0x3c9   :  { %1344 = vst [vmem:[%s2168_s7 + $0x10] sm:$0xff] %v523_v60 }
 0x3ca   :  { %1630 = dma.done.wait [#allocation5], 2048 }
 0x3cb   :  { %1631 = vsyncadd [#allocation5], 4294965248 }
 0x3cc   :  { %1632 = dma.done.wait [#allocation5 + $0x1], 4096 }
 0x3cd   :  { %1633 = vsyncadd [#allocation5 + $0x1], 4294963200 }
 0x3ce   :  { %1634 = dma.done.wait [#allocation5 + $0x2], 512 }
 0x3cf   :  { %1635 = vsyncadd [#allocation5 + $0x2], 4294966784  ;;  %1485 = vmatprep.subr.bf16.mxu1 %v1644_v37  ;;  %1493 = vmatprep.mubr.msk.bf16.mxu1 %vm1645_vm0, %v1644_v37  ;;  %v1598_v61 = vld [vmem:[%s2162_s1 + $0x20] sm:$0xff]   ;;  %v1599_v62 = vld [vmem:[%s2162_s1 + $0x28] sm:$0xff]   ;;  %v548_v38 = vpack.c.bf16 %v518_v58, %v518_v58 }
 0x3d0   :  { %693 = vmatprep.mubr.bf16.mxu0 %v1646_v49  ;;  %1486 = vmatpush3.bf16.msra.mxu1 %v1598_v61  ;;  %v1600_v63 = vld [vmem:[%s2162_s1 + $0x30] sm:$0xff]   ;;  %v1601_v36 = vld [vmem:[%s2162_s1 + $0x38] sm:$0xff]   ;;  %v641_v40 = vld [vmem:[#allocation2 + $0x28] sm:$0xff] }
 0x3d1   :  { %1487 = vmatprep.subr.bf16.mxu1 %v1644_v37  ;;  %v640_v41 = vld [vmem:[#allocation2 + $0x20] sm:$0xff]  ;;  %v643_v42 = vld [vmem:[#allocation2 + $0x38] sm:$0xff]  ;;  %v642_v43 = vld [vmem:[#allocation2 + $0x30] sm:$0xff] }
 0x3d2   :  { %v618_v50 = vld [vmem:[%s2164_s3 + $0x4] ss:$0 sm:$0xff]  ;;  %v619_v52 = vld [vmem:[%s2164_s3 + $0x5] ss:$0 sm:$0xff] }
 0x3d3   :  { %v1358_v56 = vld [vmem:[%s2164_s3 + $0x6] ss:$8 sm:$0x3] }
 0x3d4   :  { %1488 = vmatpush3.bf16.msra.mxu1 %v1599_v62  ;;  %v651_v57 = vrot.slane %v1358_v56, %v1933_v39 }
 0x3d5   :  { %1489 = vmatprep.subr.bf16.mxu1 %v1644_v37 }
 0x3d8   :  { %1490 = vmatpush3.bf16.msra.mxu1 %v1600_v63 }
 0x3d9   :  { %1491 = vmatprep.subr.bf16.mxu1 %v1644_v37 }
 0x3dc   :  { %1492 = vmatpush3.bf16.msra.mxu1 %v1601_v36 }
 0x3dd   :  { %1413 = vmatprep.subr.bf16.mxu1 %v1735_v8 }
 0x3df   :  { %1494 = vmatmul.mubr.msk.bf16.vlgmr.msra.gmra.mrb[4].mxu1 %vm336_vm2, %v548_v38 }
 0x3e0   :  { %1414 = vmatpush3.bf16.msra.mxu1 %v1695_v0  ;;  %v549_v0 = vld [vmem:[%s2164_s3 + $0x3] ss:$0 sm:$0xff] }
 0x3e1   :  { %1415 = vmatprep.subr.bf16.mxu1 %v1740_v9 }
 0x3e4   :  { %1416 = vmatpush3.bf16.msra.mxu1 %v1700_v1 }
 0x3e5   :  { %1417 = vmatprep.subr.bf16.mxu1 %v1745_v10 }
 0x3e8   :  { %1418 = vmatpush3.bf16.msra.mxu1 %v1705_v2 }
 0x3e9   :  { %1419 = vmatprep.subr.bf16.mxu1 %v1750_v11 }
 0x3ec   :  { %1420 = vmatpush3.bf16.msra.mxu1 %v1710_v3 }
 0x3ed   :  { %1421 = vmatprep.subr.bf16.mxu1 %v1755_v12 }
 0x3f0   :  { %1422 = vmatpush3.bf16.msra.mxu1 %v1715_v4 }
 0x3f1   :  { %1423 = vmatprep.subr.bf16.mxu1 %v1760_v13  ;;  %v637_v13 = vld [vmem:[#allocation2 + $0x8] sm:$0xff] }
 0x3f2   :  { %661 = vmatprep.subr.bf16.mxu0 %v637_v13 }
 0x3f4   :  { %1424 = vmatpush3.bf16.msra.mxu1 %v1720_v5 }
 0x3f5   :  { %1425 = vmatprep.subr.bf16.mxu1 %v1765_v14  ;;  %v636_v14 = vld [vmem:[#allocation2] sm:$0xff] }
 0x3f6   :  { %662 = vmatpush1.bf16.msra.mxu0 %v636_v14 }
 0x3f8   :  { %1426 = vmatpush3.bf16.msra.mxu1 %v1725_v6 }
 0x3f9   :  { %1427 = vmatprep.subr.bf16.mxu1 %v1770_v15  ;;  %v639_v15 = vld [vmem:[#allocation2 + $0x18] sm:$0xff] }
 0x3fa   :  { %663 = vmatprep.subr.bf16.mxu0 %v639_v15 }
 0x3fc   :  { %1428 = vmatpush3.bf16.msra.mxu1 %v1730_v7 }
 0x3fd   :  { %1440 = vmatprep.subr.bf16.mxu1 %v1815_v24  ;;  %v638_v24 = vld [vmem:[#allocation2 + $0x10] sm:$0xff] }
 0x3fe   :  { %664 = vmatpush1.bf16.msra.mxu0 %v638_v24 }
 0x3ff   :  { %665 = vmatprep.subr.bf16.mxu0 %v641_v40 }
 0x402   :  { %666 = vmatpush1.bf16.msra.mxu0 %v640_v41 }
 0x403   :  { %667 = vmatprep.subr.bf16.mxu0 %v643_v42  ;;  %v1603_v42 = vld [vmem:[%s2162_s1 + $0x48] sm:$0xff]  }
 0x406   :  { %668 = vmatpush1.bf16.msra.mxu0 %v642_v43  ;;  %v1604_v43 = vld [vmem:[%s2162_s1 + $0x50] sm:$0xff]  }
 0x407   :  { %1497 = vmatprep.subr.bf16.mxu0 %v1644_v37 }
 0x4b2   :  { %v611_v1 = vpop.f32.mrb[4].mxu1 }
 0x4b3   :  { %v612_v2 = vadd.f32 %v611_v1, %v549_v0  ;;  %v1495_v3 = vpop.f32.mrb[5].mxu1 }
 0x4b4   :  { %v614_v4 = vpop.f32.mrb[6].mxu1 }
 0x4b5   :  { %v617_v8 = vadd.f32 %v612_v2, %v518_v58  ;;  %v1496_v5 = vpop.f32.mrb[7].mxu1  ;;  %v655_v58 = vrot.slane %v1358_v56, %v1939_v48 }
 0x4b7   :  { %v620_v9 = vsel %vm336_vm2, %v617_v8, 0.0 }
 0x4b8   :  { %621 = vadd.xlane.f32.xlu0 %v620_v9 }
 0x545   :  { %v622_v6 = vpop.xlane.xlu0 %621 }
 0x546   :  { %v624_v10 = vmul.f32 0.015625, %v622_v6 }
 0x548   :  { %v625_v11 = vsub.f32 %v617_v8, %v624_v10 }
 0x54a   :  { %v626_v12 = vmul.f32 %v625_v11, %v625_v11 }
 0x54c   :  { %v627_v7 = vsel %vm336_vm2, %v626_v12, 0.0 }
 0x54d   :  { %628 = vadd.xlane.f32.xlu0 %v627_v7 }
 0x5da   :  { %v629_v44 = vpop.xlane.xlu0 %628 }
 0x5db   :  { %v630_v45 = vmul.f32 0.015625, %v629_v44  ;;  %v1605_v44 = vld [vmem:[%s2162_s1 + $0x58] sm:$0xff]  }
 0x5dd   :  { %v631_v46 = vadd.f32 1e-05, %v630_v45 }
 0x5df   :  { %1614 = vrsqrt.f32 %v631_v46 }
 0x5e9   :  { %v1615_v47 = vpop.eup %1614 }
 0x5ea   :  { %v633_v51 = vmul.f32 %v1615_v47, %v625_v11 }
 0x5ec   :  { %v634_v53 = vmul.f32 %v633_v51, %v618_v50  ;;  %v780_v51 = vld [vmem:[%s2164_s3 + $0x10] ss:$0 sm:$0xff] }
 0x5ee   :  { %v635_v54 = vadd.f32 %v634_v53, %v619_v52  ;;  %v781_v53 = vld [vmem:[%s2164_s3 + $0x11] ss:$0 sm:$0xff] }
 0x5f0   :  { %v644_v55 = vpack.c.bf16 %v635_v54, %v635_v54 }
 0x5f2   :  { %1359 = vmatmul.mubr.msk.bf16.vlgmr.msra.gmra.mrb[8].mxu0 %vm336_vm2, %v644_v55 }
 0x5f3   :  { %1505 = vmatprep.mubr.msk.bf16.mxu0 %vm1645_vm0, %v1644_v37 }
 0x6c5   :  { %v695_v59 = vpop.f32.mrb[8].mxu0 }
 0x6c6   :  { %v696_v60 = vadd.f32 %v695_v59, %v651_v57  ;;  %v697_v61 = vpop.f32.mrb[9].mxu0  ;;  %v807_v57 = vld [vmem:[%s2164_s3 + $0x12] ss:$0 sm:$0xff] }
 0x6c7   :  { %v698_v62 = vadd.f32 %v697_v61, %v655_v58  ;;  %v699_v63 = vpop.f32.mrb[10].mxu0 }
 0x6c8   :  { %v704_v36 = vmul.f32 0.044715, %v696_v60  ;;  %v700_v38 = vpop.f32.mrb[11].mxu0  ;;  %v702_v12 = vmul.f32 0.5, %v696_v60 }
 0x6c9   :  { %v705_v0 = vmul.f32 0.044715, %v698_v62  ;;  %v703_v13 = vmul.f32 0.5, %v698_v62 }
 0x6ca   :  { %v706_v1 = vmul.f32 %v704_v36, %v696_v60 }
 0x6cb   :  { %v707_v2 = vmul.f32 %v705_v0, %v698_v62 }
 0x6cc   :  { %v708_v3 = vmul.f32 %v706_v1, %v696_v60 }
 0x6cd   :  { %v709_v4 = vmul.f32 %v707_v2, %v698_v62 }
 0x6ce   :  { %v710_v8 = vadd.f32 %v708_v3, %v696_v60 }
 0x6cf   :  { %v711_v5 = vadd.f32 %v709_v4, %v698_v62  ;;  %v894_v4 = vld [vmem:[#allocation2 + $0x40] sm:$0xff] }
 0x6d0   :  { %v712_v9 = vmul.f32 0.7978846, %v710_v8  ;;  %v897_v8 = vld [vmem:[#allocation2 + $0x58] sm:$0xff] }
 0x6d1   :  { %v713_v6 = vmul.f32 0.7978846, %v711_v5  ;;  %v896_v5 = vld [vmem:[#allocation2 + $0x50] sm:$0xff] }
 0x6d2   :  { %1616 = vtanh.f32 %v712_v9  ;;  %v899_v9 = vld [vmem:[#allocation2 + $0x68] sm:$0xff] }
 0x6d3   :  { %1618 = vtanh.f32 %v713_v6  ;;  %v898_v6 = vld [vmem:[#allocation2 + $0x60] sm:$0xff] }
 0x6dc   :  { %v1617_v10 = vpop.eup %1616 }
 0x6dd   :  { %v1619_v11 = vpop.eup %1618  ;;  %v716_v7 = vadd.f32 1.0, %v1617_v10  ;;  %v901_v10 = vld [vmem:[#allocation2 + $0x78] sm:$0xff] }
 0x6de   :  { %v717_v14 = vadd.f32 1.0, %v1619_v11  ;;  %v900_v11 = vld [vmem:[#allocation2 + $0x70] sm:$0xff] }
 0x6df   :  { %v718_v15 = vmul.f32 %v716_v7, %v702_v12 }
 0x6e0   :  { %v719_v24 = vmul.f32 %v717_v14, %v703_v13 }
 0x6e1   :  { %v736_v41 = vpack.c.bf16 %v718_v15, %v718_v15  ;;  %v876_v15 = vld [vmem:[%s2164_s3 + $0x13] ss:$0 sm:$0xff] }
 0x6e2   :  { %v737_v40 = vpack.c.bf16 %v719_v24, %v719_v24 }
 0x6e4   :  { %771 = vmatprep.mubr.bf16.mxu1 %v737_v40  ;;  %v877_v40 = vld [vmem:[%s2164_s3 + $0x14] ss:$0 sm:$0xff] }
 0x6e5   :  { %772 = vmatmul.mubr.bf16.vlgmr.msra.gmra.mrb[8].mxu1 %v736_v41 }
 0x6e6   :  { %1441 = vmatpush3.bf16.msra.mxu1 %v1775_v16 }
 0x6e7   :  { %1442 = vmatprep.subr.bf16.mxu1 %v1820_v25 }
 0x6ea   :  { %1443 = vmatpush3.bf16.msra.mxu1 %v1780_v17  ;;  %v738_v17 = vld [vmem:[%s2164_s3 + $0x7] ss:$0 sm:$0xff] }
 0x6eb   :  { %1444 = vmatprep.subr.bf16.mxu1 %v1825_v26 }
 0x6ee   :  { %1445 = vmatpush3.bf16.msra.mxu1 %v1785_v18 }
 0x6ef   :  { %1446 = vmatprep.subr.bf16.mxu1 %v1830_v27 }
 0x6f2   :  { %1447 = vmatpush3.bf16.msra.mxu1 %v1790_v19 }
 0x6f3   :  { %1448 = vmatprep.subr.bf16.mxu1 %v1835_v28 }
 0x6f6   :  { %1449 = vmatpush3.bf16.msra.mxu1 %v1795_v20 }
 0x6f7   :  { %1450 = vmatprep.subr.bf16.mxu1 %v1840_v29 }
 0x6fa   :  { %1451 = vmatpush3.bf16.msra.mxu1 %v1800_v21 }
 0x6fb   :  { %1452 = vmatprep.subr.bf16.mxu1 %v1845_v30 }
 0x6fe   :  { %1453 = vmatpush3.bf16.msra.mxu1 %v1805_v22 }
 0x6ff   :  { %1454 = vmatprep.subr.bf16.mxu1 %v1850_v31  ;;  %v1602_v31 = vld [vmem:[%s2162_s1 + $0x40] sm:$0xff]  }
 0x700   :  { %1498 = vmatpush3.bf16.msra.mxu0 %v1602_v31 }
 0x701   :  { %1499 = vmatprep.subr.bf16.mxu0 %v1644_v37 }
 0x702   :  { %1455 = vmatpush3.bf16.msra.mxu1 %v1810_v23 }
 0x703   :  { %1533 = vmatprep.subr.bf16.mxu1 %v1644_v37 }
 0x704   :  { %1500 = vmatpush3.bf16.msra.mxu0 %v1603_v42 }
 0x705   :  { %1501 = vmatprep.subr.bf16.mxu0 %v1644_v37 }
 0x708   :  { %1502 = vmatpush3.bf16.msra.mxu0 %v1604_v43 }
 0x709   :  { %1503 = vmatprep.subr.bf16.mxu0 %v1644_v37 }
 0x70c   :  { %1504 = vmatpush3.bf16.msra.mxu0 %v1605_v44 }
 0x7b8   :  { %v1429_v16 = vpop.f32.mrb[8].mxu1 }
 0x7b9   :  { %v1430_v18 = vpop.f32.mrb[9].mxu1 }
 0x7ba   :  { %v1431_v19 = vadd.f32 %v1430_v18, %v1429_v16  ;;  %v1432_v20 = vpop.f32.mrb[10].mxu1  ;;  %v1373_v18 = vld [vmem:[%s2164_s3 + $0x15] ss:$8 sm:$0x3] }
 0x7bb   :  { %v1433_v25 = vpop.f32.mrb[11].mxu1  ;;  %v913_v20 = vrot.slane %v1373_v18, %v1939_v48 }
 0x7bc   :  { %v774_v21 = vadd.f32 %v1431_v19, %v738_v17  ;;  %v909_v19 = vrot.slane %v1373_v18, %v1933_v39 }
 0x7be   :  { %v779_v26 = vadd.f32 %v774_v21, %v635_v54 }
 0x7c0   :  { %v782_v27 = vsel %vm336_vm2, %v779_v26, 0.0 }
 0x7c1   :  { %783 = vadd.xlane.f32.xlu1 %v782_v27 }
 0x84e   :  { %v784_v22 = vpop.xlane.xlu1 %783 }
 0x84f   :  { %v785_v28 = vmul.f32 0.015625, %v784_v22 }
 0x851   :  { %v786_v29 = vsub.f32 %v779_v26, %v785_v28 }
 0x853   :  { %v787_v23 = vmul.f32 %v786_v29, %v786_v29 }
 0x855   :  { %v788_v30 = vsel %vm336_vm2, %v787_v23, 0.0 }
 0x856   :  { %789 = vadd.xlane.f32.xlu1 %v788_v30 }
 0x8e3   :  { %v790_v45 = vpop.xlane.xlu1 %789 }
 0x8e4   :  { %v791_v46 = vmul.f32 0.015625, %v790_v45 }
 0x8e6   :  { %v792_v47 = vadd.f32 1e-05, %v791_v46 }
 0x8e8   :  { %1620 = vrsqrt.f32 %v792_v47 }
 0x8f2   :  { %v1621_v50 = vpop.eup %1620 }
 0x8f3   :  { %v794_v52 = vmul.f32 %v1621_v50, %v786_v29 }
 0x8f5   :  { %v795_v54 = vmul.f32 %v794_v52, %v780_v51 }
 0x8f7   :  { %v796_v55 = vadd.f32 %v795_v54, %v781_v53 }
 0x8f9   :  { %v806_v56 = vpack.c.bf16 %v796_v55, %v796_v55 }
 0x8fb   :  { %1506 = vmatmul.mubr.msk.bf16.vlgmr.msra.gmra.mrb[12].mxu0 %vm336_vm2, %v806_v56 }
 0x8fc   :  { %951 = vmatprep.mubr.bf16.mxu0 %v1646_v49  ;;  %v895_v49 = vld [vmem:[#allocation2 + $0x48] sm:$0xff] }
 0x8fd   :  { %919 = vmatprep.subr.bf16.mxu0 %v895_v49  ;;  %v1608_v49 = vld [vmem:[%s2162_s1 + $0x70] sm:$0xff]  }
 0x8fe   :  { %920 = vmatpush1.bf16.msra.mxu0 %v894_v4  ;;  %v1609_v4 = vld [vmem:[%s2162_s1 + $0x78] sm:$0xff]  }
 0x8ff   :  { %921 = vmatprep.subr.bf16.mxu0 %v897_v8 }
 0x902   :  { %922 = vmatpush1.bf16.msra.mxu0 %v896_v5 }
 0x903   :  { %923 = vmatprep.subr.bf16.mxu0 %v899_v9 }
 0x906   :  { %924 = vmatpush1.bf16.msra.mxu0 %v898_v6 }
 0x907   :  { %925 = vmatprep.subr.bf16.mxu0 %v901_v10  ;;  %v1039_v10 = vld [vmem:[%s2164_s3 + $0x17] ss:$0 sm:$0xff] }
 0x90a   :  { %926 = vmatpush1.bf16.msra.mxu0 %v900_v11 }
 0x90b   :  { %1509 = vmatprep.subr.bf16.mxu0 %v1644_v37 }
 0x9ce   :  { %v869_v58 = vpop.f32.mrb[12].mxu0 }
 0x9cf   :  { %v870_v59 = vadd.f32 %v869_v58, %v807_v57  ;;  %v1507_v60 = vpop.f32.mrb[13].mxu0 }
 0x9d0   :  { %v872_v61 = vpop.f32.mrb[14].mxu0 }
 0x9d1   :  { %v1508_v62 = vpop.f32.mrb[15].mxu0  ;;  %v875_v63 = vadd.f32 %v870_v59, %v796_v55 }
 0x9d3   :  { %v878_v36 = vsel %vm336_vm2, %v875_v63, 0.0 }
 0x9d4   :  { %879 = vadd.xlane.f32.xlu0 %v878_v36 }
 0xa61   :  { %v880_v38 = vpop.xlane.xlu0 %879 }
 0xa62   :  { %v881_v0 = vmul.f32 0.015625, %v880_v38 }
 0xa64   :  { %v882_v1 = vsub.f32 %v875_v63, %v881_v0 }
 0xa66   :  { %v883_v2 = vmul.f32 %v882_v1, %v882_v1 }
 0xa68   :  { %v884_v3 = vsel %vm336_vm2, %v883_v2, 0.0  ;;  %v1606_v2 = vld [vmem:[%s2162_s1 + $0x60] sm:$0xff]  }
 0xa69   :  { %885 = vadd.xlane.f32.xlu1 %v884_v3  ;;  %v1607_v3 = vld [vmem:[%s2162_s1 + $0x68] sm:$0xff]  }
 0xaf6   :  { %v886_v12 = vpop.xlane.xlu1 %885 }
 0xaf7   :  { %v887_v7 = vmul.f32 0.015625, %v886_v12  ;;  %v1040_v12 = vld [vmem:[%s2164_s3 + $0x20] ss:$0 sm:$0xff] }
 0xaf9   :  { %v888_v13 = vadd.f32 1e-05, %v887_v7 }
 0xafb   :  { %1622 = vrsqrt.f32 %v888_v13 }
 0xb05   :  { %v1623_v14 = vpop.eup %1622 }
 0xb06   :  { %v890_v24 = vmul.f32 %v1623_v14, %v882_v1  ;;  %v1610_v14 = vld [vmem:[%s2162_s1 + $0x80] sm:$0xff]  }
 0xb08   :  { %v891_v41 = vmul.f32 %v890_v24, %v876_v15  ;;  %v1611_v24 = vld [vmem:[%s2162_s1 + $0x88] sm:$0xff]  }
 0xb0a   :  { %v892_v16 = vadd.f32 %v891_v41, %v877_v40  ;;  %v1612_v40 = vld [vmem:[%s2162_s1 + $0x90] sm:$0xff]   ;;  %v1613_v41 = vld [vmem:[%s2162_s1 + $0x98] sm:$0xff]  }
 0xb0c   :  { %v902_v17 = vpack.c.bf16 %v892_v16, %v892_v16 }
 0xb0e   :  { %1374 = vmatmul.mubr.msk.bf16.vlgmr.msra.gmra.mrb[16].mxu0 %vm336_vm2, %v902_v17 }
 0xb0f   :  { %1517 = vmatprep.mubr.msk.bf16.mxu0 %vm1645_vm0, %v1644_v37  ;;  %1510 = vmatpush3.bf16.msra.mxu0 %v1606_v2 }
 0xb10   :  { %1511 = vmatprep.subr.bf16.mxu0 %v1644_v37 }
 0xb13   :  { %1512 = vmatpush3.bf16.msra.mxu0 %v1607_v3 }
 0xb14   :  { %1513 = vmatprep.subr.bf16.mxu0 %v1644_v37 }
 0xb17   :  { %1514 = vmatpush3.bf16.msra.mxu0 %v1608_v49 }
 0xb18   :  { %1515 = vmatprep.subr.bf16.mxu0 %v1644_v37 }
 0xb1b   :  { %1516 = vmatpush3.bf16.msra.mxu0 %v1609_v4 }
 0xb1c   :  { %1521 = vmatprep.subr.bf16.mxu0 %v1644_v37 }
 0xbe1   :  { %v953_v25 = vpop.f32.mrb[16].mxu0 }
 0xbe2   :  { %v954_v21 = vadd.f32 %v953_v25, %v909_v19  ;;  %v955_v26 = vpop.f32.mrb[17].mxu0 }
 0xbe3   :  { %v956_v27 = vadd.f32 %v955_v26, %v913_v20  ;;  %v957_v22 = vpop.f32.mrb[18].mxu0 }
 0xbe4   :  { %v962_v28 = vmul.f32 0.044715, %v954_v21  ;;  %v958_v29 = vpop.f32.mrb[19].mxu0  ;;  %v960_v50 = vmul.f32 0.5, %v954_v21 }
 0xbe5   :  { %v963_v23 = vmul.f32 0.044715, %v956_v27  ;;  %v961_v52 = vmul.f32 0.5, %v956_v27 }
 0xbe6   :  { %v964_v30 = vmul.f32 %v962_v28, %v954_v21 }
 0xbe7   :  { %v965_v31 = vmul.f32 %v963_v23, %v956_v27 }
 0xbe8   :  { %v966_v42 = vmul.f32 %v964_v30, %v954_v21 }
 0xbe9   :  { %v967_v43 = vmul.f32 %v965_v31, %v956_v27 }
 0xbea   :  { %v968_v44 = vadd.f32 %v966_v42, %v954_v21  ;;  %v1219_v42 = vld [vmem:[%s2164_s3 + $0x23] ss:$0 sm:$0xff] }
 0xbeb   :  { %v969_v45 = vadd.f32 %v967_v43, %v956_v27 }
 0xbec   :  { %v970_v46 = vmul.f32 0.7978846, %v968_v44  ;;  %v1263_v44 = vld [vmem:[%s2164_s3 + $0x24] ss:$0 sm:$0xff] }
 0xbed   :  { %v971_v47 = vmul.f32 0.7978846, %v969_v45 }
 0xbee   :  { %1624 = vtanh.f32 %v970_v46 }
 0xbef   :  { %1626 = vtanh.f32 %v971_v47  ;;  %v1265_v47 = vld [vmem:[%s2164_s3 + $0x25] ss:$0 sm:$0xff] }
 0xbf8   :  { %v1625_v39 = vpop.eup %1624 }
 0xbf9   :  { %v1627_v48 = vpop.eup %1626  ;;  %v974_v51 = vadd.f32 1.0, %v1625_v39 }
 0xbfa   :  { %v975_v53 = vadd.f32 1.0, %v1627_v48 }
 0xbfb   :  { %v976_v54 = vmul.f32 %v974_v51, %v960_v50 }
 0xbfc   :  { %v977_v55 = vmul.f32 %v975_v53, %v961_v52 }
 0xbfd   :  { %v995_v57 = vpack.c.bf16 %v976_v54, %v976_v54 }
 0xbfe   :  { %v996_v56 = vpack.c.bf16 %v977_v55, %v977_v55 }
 0xc00   :  { %1030 = vmatprep.mubr.bf16.mxu1 %v996_v56 }
 0xc01   :  { %1031 = vmatmul.mubr.bf16.vlgmr.msra.gmra.mrb[12].mxu1 %v995_v57 }
 0xc02   :  { %1534 = vmatpush3.bf16.msra.mxu1 %v1855_v32  ;;  %1541 = vmatprep.mubr.msk.bf16.mxu1 %vm1645_vm0, %v1644_v37  ;;  %v997_v32 = vld [vmem:[%s2164_s3 + $0x16] ss:$0 sm:$0xff] }
 0xc03   :  { %1535 = vmatprep.subr.bf16.mxu1 %v1644_v37 }
 0xc06   :  { %1536 = vmatpush3.bf16.msra.mxu1 %v1860_v33 }
 0xc07   :  { %1537 = vmatprep.subr.bf16.mxu1 %v1644_v37 }
 0xc0a   :  { %1538 = vmatpush3.bf16.msra.mxu1 %v1865_v34 }
 0xc0b   :  { %1539 = vmatprep.subr.bf16.mxu1 %v1644_v37 }
 0xc0e   :  { %1540 = vmatpush3.bf16.msra.mxu1 %v1870_v35 }
 0xcd4   :  { %v1456_v58 = vpop.f32.mrb[12].mxu1 }
 0xcd5   :  { %v1457_v59 = vpop.f32.mrb[13].mxu1 }
 0xcd6   :  { %v1458_v60 = vadd.f32 %v1457_v59, %v1456_v58  ;;  %v1459_v61 = vpop.f32.mrb[14].mxu1 }
 0xcd7   :  { %v1460_v62 = vpop.f32.mrb[15].mxu1 }
 0xcd8   :  { %v1033_v63 = vadd.f32 %v1458_v60, %v997_v32 }
 0xcda   :  { %v1038_v36 = vadd.f32 %v1033_v63, %v892_v16  ;;  %v1066_v16 = vld [vmem:[%s2164_s3 + $0x21] ss:$0 sm:$0xff] }
 0xcdc   :  { %v1041_v33 = vsel %vm336_vm2, %v1038_v36, 0.0 }
 0xcdd   :  { %1042 = vadd.xlane.f32.xlu0 %v1041_v33 }
 0xd6a   :  { %v1043_v38 = vpop.xlane.xlu0 %1042 }
 0xd6b   :  { %v1044_v34 = vmul.f32 0.015625, %v1043_v38 }
 0xd6d   :  { %v1045_v0 = vsub.f32 %v1038_v36, %v1044_v34 }
 0xd6f   :  { %v1046_v1 = vmul.f32 %v1045_v0, %v1045_v0 }
 0xd71   :  { %v1047_v35 = vsel %vm336_vm2, %v1046_v1, 0.0 }
 0xd72   :  { %1048 = vadd.xlane.f32.xlu1 %v1047_v35 }
 0xdff   :  { %v1049_v8 = vpop.xlane.xlu1 %1048 }
 0xe00   :  { %v1050_v5 = vmul.f32 0.015625, %v1049_v8 }
 0xe02   :  { %v1051_v9 = vadd.f32 1e-05, %v1050_v5 }
 0xe04   :  { %1628 = vrsqrt.f32 %v1051_v9 }
 0xe0e   :  { %v1629_v6 = vpop.eup %1628 }
 0xe0f   :  { %v1053_v11 = vmul.f32 %v1629_v6, %v1045_v0 }
 0xe11   :  { %v1054_v7 = vmul.f32 %v1053_v11, %v1039_v10 }
 0xe13   :  { %v1055_v13 = vadd.f32 %v1054_v7, %v1040_v12 }
 0xe15   :  { %v1065_v15 = vpack.c.bf16 %v1055_v13, %v1055_v13 }
 0xe17   :  { %1518 = vmatmul.mubr.msk.bf16.vlgmr.msra.gmra.mrb[20].mxu0 %vm336_vm2, %v1065_v15 }
 0xe18   :  { %1522 = vmatpush3.bf16.msra.mxu0 %v1610_v14  ;;  %1529 = vmatprep.mubr.msk.bf16.mxu0 %vm1645_vm0, %v1644_v37 }
 0xe19   :  { %1523 = vmatprep.subr.bf16.mxu0 %v1644_v37 }
 0xe1c   :  { %1524 = vmatpush3.bf16.msra.mxu0 %v1611_v24 }
 0xe1d   :  { %1525 = vmatprep.subr.bf16.mxu0 %v1644_v37 }
 0xe20   :  { %1526 = vmatpush3.bf16.msra.mxu0 %v1612_v40 }
 0xe21   :  { %1527 = vmatprep.subr.bf16.mxu0 %v1644_v37  ;;  %v1145_v37 = vld [vmem:[%s2164_s3 + $0x22] ss:$0 sm:$0xff] }
 0xe24   :  { %1528 = vmatpush3.bf16.msra.mxu0 %v1613_v41 }
 0xeea   :  { %v1128_v17 = vpop.f32.mrb[20].mxu0 }
 0xeeb   :  { %v1129_v18 = vadd.f32 %v1128_v17, %v1066_v16  ;;  %v1519_v19 = vpop.f32.mrb[21].mxu0 }
 0xeec   :  { %v1131_v20 = vpop.f32.mrb[22].mxu0 }
 0xeed   :  { %v1134_v25 = vmax.f32 %v1129_v18, 0.0  ;;  %v1520_v21 = vpop.f32.mrb[23].mxu0 }
 0xeef   :  { %v1144_v26 = vpack.c.bf16 %v1134_v25, %v1134_v25 }
 0xef1   :  { %1530 = vmatmul.mubr.msk.bf16.vlgmr.msra.gmra.mrb[24].mxu0 %vm336_vm2, %v1144_v26 }
 0xfc4   :  { %v1207_v27 = vpop.f32.mrb[24].mxu0 }
 0xfc5   :  { %v1208_v22 = vadd.f32 %v1207_v27, %v1145_v37  ;;  %v1531_v28 = vpop.f32.mrb[25].mxu0 }
 0xfc6   :  { %v1210_v29 = vpop.f32.mrb[26].mxu0 }
 0xfc7   :  { %v1213_v23 = vmax.f32 %v1208_v22, 0.0  ;;  %v1532_v30 = vpop.f32.mrb[27].mxu0 }
 0xfc9   :  { %v1218_v31 = vpack.c.bf16 %v1213_v23, %v1213_v23 }
 0xfcb   :  { %1542 = vmatmul.mubr.msk.bf16.vlgmr.msra.gmra.mrb[16].mxu1 %vm336_vm2, %v1218_v31 }
0x109e   :  { %v1257_v43 = vpop.f32.mrb[16].mxu1 }
0x109f   :  { %v1258_v45 = vadd.f32 %v1257_v43, %v1219_v42  ;;  %v1543_v46 = vpop.f32.mrb[17].mxu1 }
0x10a0   :  { %v1260_v39 = vpop.f32.mrb[18].mxu1 }
0x10a1   :  { %v1264_v48 = vmax.f32 %v1258_v45, %v1263_v44  ;;  %v1544_v50 = vpop.f32.mrb[19].mxu1 }
0x10a3   :  { %v1266_v51 = vmin.f32 %v1264_v48, %v1265_v47 }
0x10a5   :  { %1267 = vst [vmem:[%s2168_s7] sm:$0xff] %v1266_v51 }
0x10a6   :  { %1272 = vsyncmov [#allocation5] }
0x10a9   :  { %s1273_s24 = vpop.sfrf %1272 }
0x10aa   :  { %p1402_p0 = scmp.ne.s32.totalorder %s1273_s24, 0 }
0x10ac   :  { %1277 = shalt.err (%p1402_p0)  }
0x10ad   :  { %1279 = vsyncmov [#allocation5 + $0x1] }
0x10b0   :  { %s1280_s25 = vpop.sfrf %1279 }
0x10b1   :  { %p1403_p1 = scmp.ne.s32.totalorder %s1280_s25, 0 }
0x10b3   :  { %1284 = shalt.err (%p1403_p1)  }
0x10b4   :  { %1286 = vsyncmov [#allocation5 + $0x2] }
0x10b7   :  { %s1287_s26 = vpop.sfrf %1286 }
0x10b8   :  { %p1404_p2 = scmp.ne.s32.totalorder %s1287_s26, 0 }
0x10ba   :  { %1291 = shalt.err (%p1404_p2)  }

</bundles_post_ra>
